<compile_context>
chip_gen: v5e
topology: v5e:2x2
jax: 0.10.0
libtpu: 0.0.40
codegen_flags: <defaults>
</compile_context>

<pallas_src>
import functools

import jax
import jax.numpy as jnp
from jax import lax
from jax.experimental import pallas as pl
from jax.experimental.pallas import tpu as pltpu


def _multihead_kernel(x_ref,
                      wqkv_ref, bqkv_ref, wo_ref, bo_ref, gamma_ref, beta_ref,
                      out_ref,
                      *, seq_len, head, d_k, d_v, eps, mxu_dtype):
    """One grid step == `block_b` batch elements of the full multi-head attention block."""
    rows, D = x_ref.shape
    L = seq_len
    Bb = rows // L
    HK = head * d_k

    def mxu(a):
        return a if mxu_dtype is None else a.astype(mxu_dtype)

    def mdot(a, b):
        return jnp.dot(mxu(a), mxu(b), preferred_element_type=jnp.float32)

    x = x_ref[...]                                       # (rows, D)

    # Fused QKV projection (one well-fed MXU dot).  1/sqrt(d_k) is pre-folded into the Q part.
    qkv = mdot(x, wqkv_ref[...]) + bqkv_ref[...]         # (rows, H*(2*d_k + d_v)), f32

    # Per-head attention, batched over the Bb batch elements of this block.
    ctxs = []
    for h in range(head):                                # small static loop (unrolled)
        qh = qkv[:, h * d_k:(h + 1) * d_k].reshape(Bb, L, d_k)
        kh = qkv[:, HK + h * d_k:HK + (h + 1) * d_k].reshape(Bb, L, d_k)
        vh = qkv[:, 2 * HK + h * d_v:2 * HK + (h + 1) * d_v].reshape(Bb, L, d_v)

        s = jnp.einsum('bqd,bkd->bqk', mxu(qh), mxu(kh),
                       preferred_element_type=jnp.float32)           # (Bb, L, L)
        s = s - jnp.max(s, axis=-1, keepdims=True)
        p = jnp.exp(s)                                                # unnormalized probs
        ctx = jnp.einsum('bqk,bkd->bqd', mxu(p), mxu(vh),
                         preferred_element_type=jnp.float32)          # (Bb, L, d_v)
        # Deferred softmax normalization: one EUP approx reciprocal per query row, applied
        # AFTER the PV matmul (d_v x fewer VPU multiplies than normalizing p directly).
        ctx = ctx * pl.reciprocal(jnp.sum(p, axis=-1, keepdims=True), approx=True)
        ctxs.append(ctx.reshape(rows, d_v))

    ctx_slab = jnp.concatenate(ctxs, axis=-1)            # (rows, H*d_v) -- once per grid step

    # Output projection + bias + dropout(identity) + residual shortcut (v == x): one dot.
    o = mdot(ctx_slab, wo_ref[...]) + bo_ref[...] + x.astype(jnp.float32)

    # LayerNorm over the feature axis, vectorized over the whole (rows, D) slab.
    mu = jnp.mean(o, axis=-1, keepdims=True)
    xc = o - mu
    var = jnp.mean(xc * xc, axis=-1, keepdims=True)
    y = xc * lax.rsqrt(var + eps)
    y = y * gamma_ref[...] + beta_ref[...]

    out_ref[...] = y.astype(out_ref.dtype)               # single dense store per grid step


def _step_vmem_bytes(block_b, L, D, head, d_k, d_v, mxu_itemsize):
    """Rough per-grid-step VMEM footprint (double-buffered I/O + resident weights + slabs)."""
    rows = block_b * L
    qkv_cols = head * (2 * d_k + d_v)
    n = 2 * rows * D * mxu_itemsize                       # x block (double-buffered)
    n += 2 * rows * D * 4                                 # output block (double-buffered)
    n += rows * (qkv_cols + head * d_v + D) * 4           # qkv / ctx / o slabs (f32)
    n += 2 * block_b * L * L * 4                          # one head's scores + probs (f32)
    n += (D * qkv_cols + head * d_v * D) * mxu_itemsize   # resident weights
    n += 8 * (qkv_cols + 3 * D) * 4                       # biases / LN params (sublane-padded)
    return n


def _default_block_b(batch):
    """Generation-aware batch blocking (see perf notes at top of file)."""
    try:
        kind = jax.devices()[0].device_kind.lower()
    except Exception:
        kind = ""
    two_tensorcores = "v7" in kind             # v7x: 2 TensorCores share the "parallel" grid
    if not two_tensorcores or batch < 2:
        return batch                           # v5e/v6e: one big step, no per-step overhead
    for steps in (2, 4, 8, 16):                # even step count -> both v7x TCs equally busy
        if batch % steps == 0:
            return batch // steps
    return 1


def multihead_forward(x, params, *, head, d_k, d_v, eps=1e-6,
                      block_b=None, mxu_dtype=None):
    """Self-attention forward (q = k = v = x), eval-mode dropout."""
    B, L, D = x.shape
    out_dtype = x.dtype
    wq, bq, wk, bk, wv, bv, wo, bo, gamma, beta = params

    # Fold the 1/sqrt(d_k) attention scale into the Q projection and fuse the QKV weights.
    scale = 1.0 / (d_k ** 0.5)
    wqkv = jnp.concatenate([wq * scale, wk, wv], axis=1)          # (D, H*(2*d_k + d_v))
    bqkv = jnp.concatenate([bq * scale, bk, bv]).reshape(1, -1)
    wo_c, x_in = wo, x
    if mxu_dtype is not None:      # bf16 MXU operands: halves x/weight DMA bytes and VMEM
        wqkv = wqkv.astype(mxu_dtype)
        wo_c = wo_c.astype(mxu_dtype)
        x_in = x_in.astype(mxu_dtype)

    bo2, g2, be2 = (a.reshape(1, -1) for a in (bo, gamma, beta))
    x2 = x_in.reshape(B * L, D)    # row-merged slab: 2-D blocks, one dense store per step

    itemsize = 4 if mxu_dtype is None else jnp.dtype(mxu_dtype).itemsize
    if block_b is None:
        block_b = _default_block_b(B)
    assert B % block_b == 0, "block_b must divide the batch dimension"

    # Shrink block_b (to a divisor of B) until the rough footprint fits the scoped budget.
    vmem_budget = 24 * 1024 * 1024
    if _step_vmem_bytes(block_b, L, D, head, d_k, d_v, itemsize) > vmem_budget:
        for cand in range(block_b, 0, -1):
            if B % cand == 0 and _step_vmem_bytes(cand, L, D, head, d_k, d_v,
                                                  itemsize) <= vmem_budget:
                block_b = cand
                break
        else:
            block_b = 1  # TODO(synk): flash-style key tiling for very long L (see header)

    # bf16 inputs pack 2 rows per sublane: keep the row block a multiple of 16 or the full slab.
    if itemsize == 2 and (block_b * L) % 16 != 0 and block_b != B:
        for cand in range(block_b + 1, B + 1):
            if B % cand == 0 and ((cand * L) % 16 == 0 or cand == B):
                block_b = cand
                break

    rows = block_b * L
    kernel = functools.partial(
        _multihead_kernel, seq_len=L, head=head, d_k=d_k, d_v=d_v,
        eps=float(eps),            # Python float -> compile-time constant
        mxu_dtype=mxu_dtype)

    operands = (x2, wqkv, bqkv, wo_c, bo2, g2, be2)

    def build(const_pipeline_mode):
        def const(arr):
            # Whole array resident across the grid (constant index_map).  Single-buffer when
            # supported: a second copy of never-changing weights is pure VMEM waste (critical
            # under v7x's 64 MiB/TC).
            if const_pipeline_mode is None:
                return pl.BlockSpec(arr.shape, lambda i: (0, 0))
            return pl.BlockSpec(arr.shape, lambda i: (0, 0),
                                pipeline_mode=const_pipeline_mode)

        return pl.pallas_call(
            kernel,
            out_shape=jax.ShapeDtypeStruct((B * L, D), out_dtype),
            grid_spec=pltpu.PrefetchScalarGridSpec(
                num_scalar_prefetch=0,
                grid=(B // block_b,),
                in_specs=[pl.BlockSpec((rows, D), lambda i: (i, 0)),
                          const(wqkv), const(bqkv), const(wo_c),
                          const(bo2), const(g2), const(be2)],
                out_specs=pl.BlockSpec((rows, D), lambda i: (i, 0)),
            ),
            compiler_params=pltpu.CompilerParams(
                dimension_semantics=("parallel",),
                # Raise toward ~48-56 MiB on v7x / ~64-100 MiB on v5e/v6e only if a larger
                # block_b / L is needed (scoped defaults: 16 MiB v5e, 32 MiB v6e/v7x).
                vmem_limit_bytes=32 * 1024 * 1024),
        )

    try:
        out2 = jax.block_until_ready(build(pl.Buffered(1))(*operands))
    except Exception:
        # pipeline_mode=Buffered(1) unsupported on this jax/libtpu: default double-buffering.
        out2 = build(None)(*operands)

    return out2.reshape(B, L, D)


def _reference_forward(x, params, *, head, d_k, d_v, eps=1e-6):
    """Pure-JAX reference mirroring the PyTorch forward (eval mode, q = k = v)."""
    wq, bq, wk, bk, wv, bv, wo, bo, gamma, beta = params
    B, L, D = x.shape
    Q = (x @ wq + bq).reshape(B, L, head, d_k).transpose(0, 2, 1, 3)
    K = (x @ wk + bk).reshape(B, L, head, d_k).transpose(0, 2, 3, 1)
    V = (x @ wv + bv).reshape(B, L, head, d_v).transpose(0, 2, 1, 3)
    s = jnp.matmul(Q / (d_k ** 0.5), K)
    p = jax.nn.softmax(s, axis=-1)
    o = jnp.matmul(p, V).transpose(0, 2, 1, 3).reshape(B, L, head * d_v)
    o = o @ wo + bo + x
    mu = o.mean(-1, keepdims=True)
    var = ((o - mu) ** 2).mean(-1, keepdims=True)
    return (o - mu) / jnp.sqrt(var + eps) * gamma + beta


if __name__ == "__main__":
    # Small shapes consistent with the module's forward: (batch, seq, d_feature)
    B, L, D = 2, 8, 32
    head, d_k, d_v = 4, 8, 8

    key = jax.random.PRNGKey(0)
    keys = jax.random.split(key, 9)

    x = jax.random.normal(keys[0], (B, L, D), dtype=jnp.float32)  # q = k = v

    def init_linear(kw, kb, fan_in, fan_out):
        bound = 1.0 / (fan_in ** 0.5)
        w = jax.random.uniform(kw, (fan_in, fan_out), jnp.float32, -bound, bound)
        b = jax.random.uniform(kb, (fan_out,), jnp.float32, -bound, bound)
        return w, b

    wq, bq = init_linear(keys[1], keys[2], D, head * d_k)
    wk, bk = init_linear(keys[3], keys[4], D, head * d_k)
    wv, bv = init_linear(keys[5], keys[6], D, head * d_v)
    wo, bo = init_linear(keys[7], keys[8], head * d_v, D)
    gamma = jnp.ones((D,), jnp.float32)
    beta = jnp.zeros((D,), jnp.float32)
    params = (wq, bq, wk, bk, wv, bv, wo, bo, gamma, beta)

    ref = _reference_forward(x, params, head=head, d_k=d_k, d_v=d_v)

    # f32 MXU path (strictest parity with the PyTorch module).
    out = multihead_forward(x, params, head=head, d_k=d_k, d_v=d_v)
    out = jax.block_until_ready(out)
    assert out.shape == (B, L, D)
    # Tolerance covers the EUP approximate reciprocal used for the softmax denominator.
    assert jnp.allclose(out, ref, atol=2e-3, rtol=2e-3), "f32 path mismatch vs reference"

    # bf16 MXU operand path (recommended on v6e/v7x): f32 accumulation + f32 LayerNorm.
    out_bf16 = multihead_forward(x, params, head=head, d_k=d_k, d_v=d_v,
                                 mxu_dtype=jnp.bfloat16)
    out_bf16 = jax.block_until_ready(out_bf16)
    assert out_bf16.shape == (B, L, D)
    assert jnp.allclose(out_bf16, ref, atol=1e-1, rtol=1e-1), "bf16 path mismatch vs reference"

    print("KERNEL_OK")
</pallas_src>

<mosaic_0001>
module attributes {stable_mosaic.version = 11 : i64} {
  func.func @_multihead_kernel(%arg0: i32, %arg1: memref<16x32xf32, #tpu.memory_space<vmem>>, %arg2: memref<32x96xf32, #tpu.memory_space<vmem>>, %arg3: memref<1x96xf32, #tpu.memory_space<vmem>>, %arg4: memref<32x32xf32, #tpu.memory_space<vmem>>, %arg5: memref<1x32xf32, #tpu.memory_space<vmem>>, %arg6: memref<1x32xf32, #tpu.memory_space<vmem>>, %arg7: memref<1x32xf32, #tpu.memory_space<vmem>>, %arg8: memref<16x32xf32, #tpu.memory_space<vmem>>) attributes {dimension_semantics = [#tpu.dimension_semantics<parallel>], iteration_bounds = array<i64: 1>, scalar_prefetch = 0 : i64, scratch_operands = 0 : i64, tpu.core_type = #tpu.core_type<tc>, window_params = [{transform_indices = @transform_0, window_bounds = array<i64: 16, 32>}, {pipeline_mode = #tpu.pipeline_mode<synchronous>, transform_indices = @transform_1, window_bounds = array<i64: 32, 96>}, {pipeline_mode = #tpu.pipeline_mode<synchronous>, transform_indices = @transform_2, window_bounds = array<i64: 1, 96>}, {pipeline_mode = #tpu.pipeline_mode<synchronous>, transform_indices = @transform_3, window_bounds = array<i64: 32, 32>}, {pipeline_mode = #tpu.pipeline_mode<synchronous>, transform_indices = @transform_4, window_bounds = array<i64: 1, 32>}, {pipeline_mode = #tpu.pipeline_mode<synchronous>, transform_indices = @transform_5, window_bounds = array<i64: 1, 32>}, {pipeline_mode = #tpu.pipeline_mode<synchronous>, transform_indices = @transform_6, window_bounds = array<i64: 1, 32>}, {transform_indices = @transform_7, window_bounds = array<i64: 16, 32>}]} {
    %c0 = arith.constant 0 : index
    %c0_0 = arith.constant 0 : index
    %0 = vector.load %arg1[%c0, %c0_0] : memref<16x32xf32, #tpu.memory_space<vmem>>, vector<16x32xf32>
    %c0_1 = arith.constant 0 : index
    %c0_2 = arith.constant 0 : index
    %1 = vector.load %arg2[%c0_1, %c0_2] : memref<32x96xf32, #tpu.memory_space<vmem>>, vector<32x96xf32>
    %cst = arith.constant dense<0.000000e+00> : vector<16x96xf32>
    %2 = tpu.matmul %0, %1, %cst {dimension_numbers = #tpu.dot_dimension_numbers<[1], [0], [0], [1], [0, 0, 1, 1], [], []>} : vector<16x32xf32>, vector<32x96xf32>, vector<16x96xf32> -> vector<16x96xf32>
    %c0_3 = arith.constant 0 : index
    %c0_4 = arith.constant 0 : index
    %3 = vector.load %arg3[%c0_3, %c0_4] : memref<1x96xf32, #tpu.memory_space<vmem>>, vector<1x96xf32>
    %4 = vector.broadcast %3 : vector<1x96xf32> to vector<16x96xf32>
    %5 = arith.addf %2, %4 : vector<16x96xf32>
    %6 = vector.extract_strided_slice %5 {offsets = [0, 0], sizes = [16, 8], strides = [1, 1]} : vector<16x96xf32> to vector<16x8xf32>
    %7 = vector.shape_cast %6 : vector<16x8xf32> to vector<2x8x8xf32>
    %8 = vector.extract_strided_slice %5 {offsets = [0, 32], sizes = [16, 8], strides = [1, 1]} : vector<16x96xf32> to vector<16x8xf32>
    %9 = vector.shape_cast %8 : vector<16x8xf32> to vector<2x8x8xf32>
    %10 = vector.extract_strided_slice %5 {offsets = [0, 64], sizes = [16, 8], strides = [1, 1]} : vector<16x96xf32> to vector<16x8xf32>
    %11 = vector.shape_cast %10 : vector<16x8xf32> to vector<2x8x8xf32>
    "tpu.trace_start"() <{level = 10 : i32, message = "bqd,bkd->bqk"}> : () -> ()
    %cst_5 = arith.constant dense<0.000000e+00> : vector<2x8x8xf32>
    %12 = tpu.matmul %7, %9, %cst_5 {dimension_numbers = #tpu.dot_dimension_numbers<[2], [2], [1], [1], [0, 0, 0, 1, 1, 1], [0], [0]>} : vector<2x8x8xf32>, vector<2x8x8xf32>, vector<2x8x8xf32> -> vector<2x8x8xf32>
    "tpu.trace_stop"() : () -> ()
    %cst_6 = arith.constant dense<0xFF800000> : vector<2x8xf32>
    %13 = vector.multi_reduction <maximumf>, %12, %cst_6 [2] : vector<2x8x8xf32> to vector<2x8xf32>
    %14 = vector.shape_cast %13 : vector<2x8xf32> to vector<2x8x1xf32>
    %15 = vector.broadcast %14 : vector<2x8x1xf32> to vector<2x8x8xf32>
    %16 = arith.subf %12, %15 : vector<2x8x8xf32>
    %17 = math.exp %16 : vector<2x8x8xf32>
    "tpu.trace_start"() <{level = 10 : i32, message = "bqk,bkd->bqd"}> : () -> ()
    %cst_7 = arith.constant dense<0.000000e+00> : vector<2x8x8xf32>
    %18 = tpu.matmul %17, %11, %cst_7 {dimension_numbers = #tpu.dot_dimension_numbers<[2], [1], [1], [2], [0, 0, 0, 1, 1, 2], [0], [0]>} : vector<2x8x8xf32>, vector<2x8x8xf32>, vector<2x8x8xf32> -> vector<2x8x8xf32>
    "tpu.trace_stop"() : () -> ()
    %cst_8 = arith.constant dense<0.000000e+00> : vector<2x8xf32>
    %19 = vector.multi_reduction <add>, %17, %cst_8 [2] : vector<2x8x8xf32> to vector<2x8xf32>
    %20 = vector.shape_cast %19 : vector<2x8xf32> to vector<2x8x1xf32>
    %21 = tpu.reciprocal %20 {approx = true} : vector<2x8x1xf32> -> vector<2x8x1xf32>
    %22 = vector.broadcast %21 : vector<2x8x1xf32> to vector<2x8x8xf32>
    %23 = arith.mulf %18, %22 : vector<2x8x8xf32>
    %24 = vector.shape_cast %23 : vector<2x8x8xf32> to vector<16x8xf32>
    %25 = vector.extract_strided_slice %5 {offsets = [0, 8], sizes = [16, 8], strides = [1, 1]} : vector<16x96xf32> to vector<16x8xf32>
    %26 = vector.shape_cast %25 : vector<16x8xf32> to vector<2x8x8xf32>
    %27 = vector.extract_strided_slice %5 {offsets = [0, 40], sizes = [16, 8], strides = [1, 1]} : vector<16x96xf32> to vector<16x8xf32>
    %28 = vector.shape_cast %27 : vector<16x8xf32> to vector<2x8x8xf32>
    %29 = vector.extract_strided_slice %5 {offsets = [0, 72], sizes = [16, 8], strides = [1, 1]} : vector<16x96xf32> to vector<16x8xf32>
    %30 = vector.shape_cast %29 : vector<16x8xf32> to vector<2x8x8xf32>
    "tpu.trace_start"() <{level = 10 : i32, message = "bqd,bkd->bqk"}> : () -> ()
    %cst_9 = arith.constant dense<0.000000e+00> : vector<2x8x8xf32>
    %31 = tpu.matmul %26, %28, %cst_9 {dimension_numbers = #tpu.dot_dimension_numbers<[2], [2], [1], [1], [0, 0, 0, 1, 1, 1], [0], [0]>} : vector<2x8x8xf32>, vector<2x8x8xf32>, vector<2x8x8xf32> -> vector<2x8x8xf32>
    "tpu.trace_stop"() : () -> ()
    %cst_10 = arith.constant dense<0xFF800000> : vector<2x8xf32>
    %32 = vector.multi_reduction <maximumf>, %31, %cst_10 [2] : vector<2x8x8xf32> to vector<2x8xf32>
    %33 = vector.shape_cast %32 : vector<2x8xf32> to vector<2x8x1xf32>
    %34 = vector.broadcast %33 : vector<2x8x1xf32> to vector<2x8x8xf32>
    %35 = arith.subf %31, %34 : vector<2x8x8xf32>
    %36 = math.exp %35 : vector<2x8x8xf32>
    "tpu.trace_start"() <{level = 10 : i32, message = "bqk,bkd->bqd"}> : () -> ()
    %cst_11 = arith.constant dense<0.000000e+00> : vector<2x8x8xf32>
    %37 = tpu.matmul %36, %30, %cst_11 {dimension_numbers = #tpu.dot_dimension_numbers<[2], [1], [1], [2], [0, 0, 0, 1, 1, 2], [0], [0]>} : vector<2x8x8xf32>, vector<2x8x8xf32>, vector<2x8x8xf32> -> vector<2x8x8xf32>
    "tpu.trace_stop"() : () -> ()
    %cst_12 = arith.constant dense<0.000000e+00> : vector<2x8xf32>
    %38 = vector.multi_reduction <add>, %36, %cst_12 [2] : vector<2x8x8xf32> to vector<2x8xf32>
    %39 = vector.shape_cast %38 : vector<2x8xf32> to vector<2x8x1xf32>
    %40 = tpu.reciprocal %39 {approx = true} : vector<2x8x1xf32> -> vector<2x8x1xf32>
    %41 = vector.broadcast %40 : vector<2x8x1xf32> to vector<2x8x8xf32>
    %42 = arith.mulf %37, %41 : vector<2x8x8xf32>
    %43 = vector.shape_cast %42 : vector<2x8x8xf32> to vector<16x8xf32>
    %44 = vector.extract_strided_slice %5 {offsets = [0, 16], sizes = [16, 8], strides = [1, 1]} : vector<16x96xf32> to vector<16x8xf32>
    %45 = vector.shape_cast %44 : vector<16x8xf32> to vector<2x8x8xf32>
    %46 = vector.extract_strided_slice %5 {offsets = [0, 48], sizes = [16, 8], strides = [1, 1]} : vector<16x96xf32> to vector<16x8xf32>
    %47 = vector.shape_cast %46 : vector<16x8xf32> to vector<2x8x8xf32>
    %48 = vector.extract_strided_slice %5 {offsets = [0, 80], sizes = [16, 8], strides = [1, 1]} : vector<16x96xf32> to vector<16x8xf32>
    %49 = vector.shape_cast %48 : vector<16x8xf32> to vector<2x8x8xf32>
    "tpu.trace_start"() <{level = 10 : i32, message = "bqd,bkd->bqk"}> : () -> ()
    %cst_13 = arith.constant dense<0.000000e+00> : vector<2x8x8xf32>
    %50 = tpu.matmul %45, %47, %cst_13 {dimension_numbers = #tpu.dot_dimension_numbers<[2], [2], [1], [1], [0, 0, 0, 1, 1, 1], [0], [0]>} : vector<2x8x8xf32>, vector<2x8x8xf32>, vector<2x8x8xf32> -> vector<2x8x8xf32>
    "tpu.trace_stop"() : () -> ()
    %cst_14 = arith.constant dense<0xFF800000> : vector<2x8xf32>
    %51 = vector.multi_reduction <maximumf>, %50, %cst_14 [2] : vector<2x8x8xf32> to vector<2x8xf32>
    %52 = vector.shape_cast %51 : vector<2x8xf32> to vector<2x8x1xf32>
    %53 = vector.broadcast %52 : vector<2x8x1xf32> to vector<2x8x8xf32>
    %54 = arith.subf %50, %53 : vector<2x8x8xf32>
    %55 = math.exp %54 : vector<2x8x8xf32>
    "tpu.trace_start"() <{level = 10 : i32, message = "bqk,bkd->bqd"}> : () -> ()
    %cst_15 = arith.constant dense<0.000000e+00> : vector<2x8x8xf32>
    %56 = tpu.matmul %55, %49, %cst_15 {dimension_numbers = #tpu.dot_dimension_numbers<[2], [1], [1], [2], [0, 0, 0, 1, 1, 2], [0], [0]>} : vector<2x8x8xf32>, vector<2x8x8xf32>, vector<2x8x8xf32> -> vector<2x8x8xf32>
    "tpu.trace_stop"() : () -> ()
    %cst_16 = arith.constant dense<0.000000e+00> : vector<2x8xf32>
    %57 = vector.multi_reduction <add>, %55, %cst_16 [2] : vector<2x8x8xf32> to vector<2x8xf32>
    %58 = vector.shape_cast %57 : vector<2x8xf32> to vector<2x8x1xf32>
    %59 = tpu.reciprocal %58 {approx = true} : vector<2x8x1xf32> -> vector<2x8x1xf32>
    %60 = vector.broadcast %59 : vector<2x8x1xf32> to vector<2x8x8xf32>
    %61 = arith.mulf %56, %60 : vector<2x8x8xf32>
    %62 = vector.shape_cast %61 : vector<2x8x8xf32> to vector<16x8xf32>
    %63 = vector.extract_strided_slice %5 {offsets = [0, 24], sizes = [16, 8], strides = [1, 1]} : vector<16x96xf32> to vector<16x8xf32>
    %64 = vector.shape_cast %63 : vector<16x8xf32> to vector<2x8x8xf32>
    %65 = vector.extract_strided_slice %5 {offsets = [0, 56], sizes = [16, 8], strides = [1, 1]} : vector<16x96xf32> to vector<16x8xf32>
    %66 = vector.shape_cast %65 : vector<16x8xf32> to vector<2x8x8xf32>
    %67 = vector.extract_strided_slice %5 {offsets = [0, 88], sizes = [16, 8], strides = [1, 1]} : vector<16x96xf32> to vector<16x8xf32>
    %68 = vector.shape_cast %67 : vector<16x8xf32> to vector<2x8x8xf32>
    "tpu.trace_start"() <{level = 10 : i32, message = "bqd,bkd->bqk"}> : () -> ()
    %cst_17 = arith.constant dense<0.000000e+00> : vector<2x8x8xf32>
    %69 = tpu.matmul %64, %66, %cst_17 {dimension_numbers = #tpu.dot_dimension_numbers<[2], [2], [1], [1], [0, 0, 0, 1, 1, 1], [0], [0]>} : vector<2x8x8xf32>, vector<2x8x8xf32>, vector<2x8x8xf32> -> vector<2x8x8xf32>
    "tpu.trace_stop"() : () -> ()
    %cst_18 = arith.constant dense<0xFF800000> : vector<2x8xf32>
    %70 = vector.multi_reduction <maximumf>, %69, %cst_18 [2] : vector<2x8x8xf32> to vector<2x8xf32>
    %71 = vector.shape_cast %70 : vector<2x8xf32> to vector<2x8x1xf32>
    %72 = vector.broadcast %71 : vector<2x8x1xf32> to vector<2x8x8xf32>
    %73 = arith.subf %69, %72 : vector<2x8x8xf32>
    %74 = math.exp %73 : vector<2x8x8xf32>
    "tpu.trace_start"() <{level = 10 : i32, message = "bqk,bkd->bqd"}> : () -> ()
    %cst_19 = arith.constant dense<0.000000e+00> : vector<2x8x8xf32>
    %75 = tpu.matmul %74, %68, %cst_19 {dimension_numbers = #tpu.dot_dimension_numbers<[2], [1], [1], [2], [0, 0, 0, 1, 1, 2], [0], [0]>} : vector<2x8x8xf32>, vector<2x8x8xf32>, vector<2x8x8xf32> -> vector<2x8x8xf32>
    "tpu.trace_stop"() : () -> ()
    %cst_20 = arith.constant dense<0.000000e+00> : vector<2x8xf32>
    %76 = vector.multi_reduction <add>, %74, %cst_20 [2] : vector<2x8x8xf32> to vector<2x8xf32>
    %77 = vector.shape_cast %76 : vector<2x8xf32> to vector<2x8x1xf32>
    %78 = tpu.reciprocal %77 {approx = true} : vector<2x8x1xf32> -> vector<2x8x1xf32>
    %79 = vector.broadcast %78 : vector<2x8x1xf32> to vector<2x8x8xf32>
    %80 = arith.mulf %75, %79 : vector<2x8x8xf32>
    %81 = vector.shape_cast %80 : vector<2x8x8xf32> to vector<16x8xf32>
    %82 = tpu.concatenate %24, %43, %62, %81 in 1 : vector<16x8xf32>, vector<16x8xf32>, vector<16x8xf32>, vector<16x8xf32> -> vector<16x32xf32>
    %c0_21 = arith.constant 0 : index
    %c0_22 = arith.constant 0 : index
    %83 = vector.load %arg4[%c0_21, %c0_22] : memref<32x32xf32, #tpu.memory_space<vmem>>, vector<32x32xf32>
    %cst_23 = arith.constant dense<0.000000e+00> : vector<16x32xf32>
    %84 = tpu.matmul %82, %83, %cst_23 {dimension_numbers = #tpu.dot_dimension_numbers<[1], [0], [0], [1], [0, 0, 1, 1], [], []>} : vector<16x32xf32>, vector<32x32xf32>, vector<16x32xf32> -> vector<16x32xf32>
    %c0_24 = arith.constant 0 : index
    %c0_25 = arith.constant 0 : index
    %85 = vector.load %arg5[%c0_24, %c0_25] : memref<1x32xf32, #tpu.memory_space<vmem>>, vector<1x32xf32>
    %86 = vector.broadcast %85 : vector<1x32xf32> to vector<16x32xf32>
    %87 = arith.addf %84, %86 : vector<16x32xf32>
    %88 = arith.addf %87, %0 : vector<16x32xf32>
    %cst_26 = arith.constant dense<0.000000e+00> : vector<16xf32>
    %89 = vector.multi_reduction <add>, %88, %cst_26 [1] : vector<16x32xf32> to vector<16xf32>
    %90 = vector.shape_cast %89 : vector<16xf32> to vector<16x1xf32>
    %cst_27 = arith.constant 3.200000e+01 : f32
    %91 = vector.broadcast %cst_27 : f32 to vector<16x1xf32>
    %92 = arith.divf %90, %91 : vector<16x1xf32>
    %93 = vector.broadcast %92 : vector<16x1xf32> to vector<16x32xf32>
    %94 = arith.subf %88, %93 : vector<16x32xf32>
    %95 = arith.mulf %94, %94 : vector<16x32xf32>
    %cst_28 = arith.constant dense<0.000000e+00> : vector<16xf32>
    %96 = vector.multi_reduction <add>, %95, %cst_28 [1] : vector<16x32xf32> to vector<16xf32>
    %97 = vector.shape_cast %96 : vector<16xf32> to vector<16x1xf32>
    %cst_29 = arith.constant 3.200000e+01 : f32
    %98 = vector.broadcast %cst_29 : f32 to vector<16x1xf32>
    %99 = arith.divf %97, %98 : vector<16x1xf32>
    %cst_30 = arith.constant 9.99999997E-7 : f32
    %100 = vector.broadcast %cst_30 : f32 to vector<16x1xf32>
    %101 = arith.addf %99, %100 : vector<16x1xf32>
    %102 = math.rsqrt %101 : vector<16x1xf32>
    %103 = vector.broadcast %102 : vector<16x1xf32> to vector<16x32xf32>
    %104 = arith.mulf %94, %103 : vector<16x32xf32>
    %c0_31 = arith.constant 0 : index
    %c0_32 = arith.constant 0 : index
    %105 = vector.load %arg6[%c0_31, %c0_32] : memref<1x32xf32, #tpu.memory_space<vmem>>, vector<1x32xf32>
    %106 = vector.broadcast %105 : vector<1x32xf32> to vector<16x32xf32>
    %107 = arith.mulf %104, %106 : vector<16x32xf32>
    %c0_33 = arith.constant 0 : index
    %c0_34 = arith.constant 0 : index
    %108 = vector.load %arg7[%c0_33, %c0_34] : memref<1x32xf32, #tpu.memory_space<vmem>>, vector<1x32xf32>
    %109 = vector.broadcast %108 : vector<1x32xf32> to vector<16x32xf32>
    %110 = arith.addf %107, %109 : vector<16x32xf32>
    %c0_35 = arith.constant 0 : index
    %c0_36 = arith.constant 0 : index
    %111 = vector.load %arg8[%c0_35, %c0_36] : memref<16x32xf32, #tpu.memory_space<vmem>>, vector<16x32xf32>
    tpu.vector_store %arg8[%c0_35, %c0_36], %110 {strides = array<i32>} : memref<16x32xf32, #tpu.memory_space<vmem>>, vector<16x32xf32>,
    return
  }
  func.func @transform_0(%arg0: i32) -> (i32, i32) {
    %c0_i32 = arith.constant 0 : i32
    %c0_i32_0 = arith.constant 0 : i32
    return %arg0, %c0_i32 : i32, i32
  }
  func.func @transform_1(%arg0: i32) -> (i32, i32) {
    %c0_i32 = arith.constant 0 : i32
    %c0_i32_0 = arith.constant 0 : i32
    %c0_i32_1 = arith.constant 0 : i32
    return %c0_i32, %c0_i32_0 : i32, i32
  }
  func.func @transform_2(%arg0: i32) -> (i32, i32) {
    %c0_i32 = arith.constant 0 : i32
    %c0_i32_0 = arith.constant 0 : i32
    %c0_i32_1 = arith.constant 0 : i32
    return %c0_i32, %c0_i32_0 : i32, i32
  }
  func.func @transform_3(%arg0: i32) -> (i32, i32) {
    %c0_i32 = arith.constant 0 : i32
    %c0_i32_0 = arith.constant 0 : i32
    %c0_i32_1 = arith.constant 0 : i32
    return %c0_i32, %c0_i32_0 : i32, i32
  }
  func.func @transform_4(%arg0: i32) -> (i32, i32) {
    %c0_i32 = arith.constant 0 : i32
    %c0_i32_0 = arith.constant 0 : i32
    %c0_i32_1 = arith.constant 0 : i32
    return %c0_i32, %c0_i32_0 : i32, i32
  }
  func.func @transform_5(%arg0: i32) -> (i32, i32) {
    %c0_i32 = arith.constant 0 : i32
    %c0_i32_0 = arith.constant 0 : i32
    %c0_i32_1 = arith.constant 0 : i32
    return %c0_i32, %c0_i32_0 : i32, i32
  }
  func.func @transform_6(%arg0: i32) -> (i32, i32) {
    %c0_i32 = arith.constant 0 : i32
    %c0_i32_0 = arith.constant 0 : i32
    %c0_i32_1 = arith.constant 0 : i32
    return %c0_i32, %c0_i32_0 : i32, i32
  }
  func.func @transform_7(%arg0: i32) -> (i32, i32) {
    %c0_i32 = arith.constant 0 : i32
    %c0_i32_0 = arith.constant 0 : i32
    return %arg0, %c0_i32 : i32, i32
  }
}

module attributes {stable_mosaic.version = 11 : i64} {
  func.func @_multihead_kernel(%arg0: i32, %arg1: memref<16x32xf32, #tpu.memory_space<vmem>>, %arg2: memref<32x96xf32, #tpu.memory_space<vmem>>, %arg3: memref<1x96xf32, #tpu.memory_space<vmem>>, %arg4: memref<32x32xf32, #tpu.memory_space<vmem>>, %arg5: memref<1x32xf32, #tpu.memory_space<vmem>>, %arg6: memref<1x32xf32, #tpu.memory_space<vmem>>, %arg7: memref<1x32xf32, #tpu.memory_space<vmem>>, %arg8: memref<16x32xf32, #tpu.memory_space<vmem>>) attributes {dimension_semantics = [#tpu.dimension_semantics<parallel>], iteration_bounds = array<i64: 1>, scalar_prefetch = 0 : i64, scratch_operands = 0 : i64, tpu.core_type = #tpu.core_type<tc>, window_params = [{transform_indices = @transform_0, window_bounds = array<i64: 16, 32>}, {pipeline_mode = #tpu.pipeline_mode<synchronous>, transform_indices = @transform_1, window_bounds = array<i64: 32, 96>}, {pipeline_mode = #tpu.pipeline_mode<synchronous>, transform_indices = @transform_2, window_bounds = array<i64: 1, 96>}, {pipeline_mode = #tpu.pipeline_mode<synchronous>, transform_indices = @transform_3, window_bounds = array<i64: 32, 32>}, {pipeline_mode = #tpu.pipeline_mode<synchronous>, transform_indices = @transform_4, window_bounds = array<i64: 1, 32>}, {pipeline_mode = #tpu.pipeline_mode<synchronous>, transform_indices = @transform_5, window_bounds = array<i64: 1, 32>}, {pipeline_mode = #tpu.pipeline_mode<synchronous>, transform_indices = @transform_6, window_bounds = array<i64: 1, 32>}, {transform_indices = @transform_7, window_bounds = array<i64: 16, 32>}]} {
    %c0 = arith.constant 0 : index
    %c0_0 = arith.constant 0 : index
    %0 = vector.load %arg1[%c0, %c0_0] : memref<16x32xf32, #tpu.memory_space<vmem>>, vector<16x32xf32>
    %c0_1 = arith.constant 0 : index
    %c0_2 = arith.constant 0 : index
    %1 = vector.load %arg2[%c0_1, %c0_2] : memref<32x96xf32, #tpu.memory_space<vmem>>, vector<32x96xf32>
    %cst = arith.constant dense<0.000000e+00> : vector<16x96xf32>
    %2 = tpu.matmul %0, %1, %cst {dimension_numbers = #tpu.dot_dimension_numbers<[1], [0], [0], [1], [0, 0, 1, 1], [], []>} : vector<16x32xf32>, vector<32x96xf32>, vector<16x96xf32> -> vector<16x96xf32>
    %c0_3 = arith.constant 0 : index
    %c0_4 = arith.constant 0 : index
    %3 = vector.load %arg3[%c0_3, %c0_4] : memref<1x96xf32, #tpu.memory_space<vmem>>, vector<1x96xf32>
    %4 = vector.broadcast %3 : vector<1x96xf32> to vector<16x96xf32>
    %5 = arith.addf %2, %4 : vector<16x96xf32>
    %6 = vector.extract_strided_slice %5 {offsets = [0, 0], sizes = [16, 8], strides = [1, 1]} : vector<16x96xf32> to vector<16x8xf32>
    %7 = vector.shape_cast %6 : vector<16x8xf32> to vector<2x8x8xf32>
    %8 = vector.extract_strided_slice %5 {offsets = [0, 32], sizes = [16, 8], strides = [1, 1]} : vector<16x96xf32> to vector<16x8xf32>
    %9 = vector.shape_cast %8 : vector<16x8xf32> to vector<2x8x8xf32>
    %10 = vector.extract_strided_slice %5 {offsets = [0, 64], sizes = [16, 8], strides = [1, 1]} : vector<16x96xf32> to vector<16x8xf32>
    %11 = vector.shape_cast %10 : vector<16x8xf32> to vector<2x8x8xf32>
    "tpu.trace_start"() <{level = 10 : i32, message = "bqd,bkd->bqk"}> : () -> ()
    %cst_5 = arith.constant dense<0.000000e+00> : vector<2x8x8xf32>
    %12 = tpu.matmul %7, %9, %cst_5 {dimension_numbers = #tpu.dot_dimension_numbers<[2], [2], [1], [1], [0, 0, 0, 1, 1, 1], [0], [0]>} : vector<2x8x8xf32>, vector<2x8x8xf32>, vector<2x8x8xf32> -> vector<2x8x8xf32>
    "tpu.trace_stop"() : () -> ()
    %cst_6 = arith.constant dense<0xFF800000> : vector<2x8xf32>
    %13 = vector.multi_reduction <maximumf>, %12, %cst_6 [2] : vector<2x8x8xf32> to vector<2x8xf32>
    %14 = vector.shape_cast %13 : vector<2x8xf32> to vector<2x8x1xf32>
    %15 = vector.broadcast %14 : vector<2x8x1xf32> to vector<2x8x8xf32>
    %16 = arith.subf %12, %15 : vector<2x8x8xf32>
    %17 = math.exp %16 : vector<2x8x8xf32>
    "tpu.trace_start"() <{level = 10 : i32, message = "bqk,bkd->bqd"}> : () -> ()
    %cst_7 = arith.constant dense<0.000000e+00> : vector<2x8x8xf32>
    %18 = tpu.matmul %17, %11, %cst_7 {dimension_numbers = #tpu.dot_dimension_numbers<[2], [1], [1], [2], [0, 0, 0, 1, 1, 2], [0], [0]>} : vector<2x8x8xf32>, vector<2x8x8xf32>, vector<2x8x8xf32> -> vector<2x8x8xf32>
    "tpu.trace_stop"() : () -> ()
    %cst_8 = arith.constant dense<0.000000e+00> : vector<2x8xf32>
    %19 = vector.multi_reduction <add>, %17, %cst_8 [2] : vector<2x8x8xf32> to vector<2x8xf32>
    %20 = vector.shape_cast %19 : vector<2x8xf32> to vector<2x8x1xf32>
    %21 = tpu.reciprocal %20 {approx = true} : vector<2x8x1xf32> -> vector<2x8x1xf32>
    %22 = vector.broadcast %21 : vector<2x8x1xf32> to vector<2x8x8xf32>
    %23 = arith.mulf %18, %22 : vector<2x8x8xf32>
    %24 = vector.shape_cast %23 : vector<2x8x8xf32> to vector<16x8xf32>
    %25 = vector.extract_strided_slice %5 {offsets = [0, 8], sizes = [16, 8], strides = [1, 1]} : vector<16x96xf32> to vector<16x8xf32>
    %26 = vector.shape_cast %25 : vector<16x8xf32> to vector<2x8x8xf32>
    %27 = vector.extract_strided_slice %5 {offsets = [0, 40], sizes = [16, 8], strides = [1, 1]} : vector<16x96xf32> to vector<16x8xf32>
    %28 = vector.shape_cast %27 : vector<16x8xf32> to vector<2x8x8xf32>
    %29 = vector.extract_strided_slice %5 {offsets = [0, 72], sizes = [16, 8], strides = [1, 1]} : vector<16x96xf32> to vector<16x8xf32>
    %30 = vector.shape_cast %29 : vector<16x8xf32> to vector<2x8x8xf32>
    "tpu.trace_start"() <{level = 10 : i32, message = "bqd,bkd->bqk"}> : () -> ()
    %cst_9 = arith.constant dense<0.000000e+00> : vector<2x8x8xf32>
    %31 = tpu.matmul %26, %28, %cst_9 {dimension_numbers = #tpu.dot_dimension_numbers<[2], [2], [1], [1], [0, 0, 0, 1, 1, 1], [0], [0]>} : vector<2x8x8xf32>, vector<2x8x8xf32>, vector<2x8x8xf32> -> vector<2x8x8xf32>
    "tpu.trace_stop"() : () -> ()
    %cst_10 = arith.constant dense<0xFF800000> : vector<2x8xf32>
    %32 = vector.multi_reduction <maximumf>, %31, %cst_10 [2] : vector<2x8x8xf32> to vector<2x8xf32>
    %33 = vector.shape_cast %32 : vector<2x8xf32> to vector<2x8x1xf32>
    %34 = vector.broadcast %33 : vector<2x8x1xf32> to vector<2x8x8xf32>
    %35 = arith.subf %31, %34 : vector<2x8x8xf32>
    %36 = math.exp %35 : vector<2x8x8xf32>
    "tpu.trace_start"() <{level = 10 : i32, message = "bqk,bkd->bqd"}> : () -> ()
    %cst_11 = arith.constant dense<0.000000e+00> : vector<2x8x8xf32>
    %37 = tpu.matmul %36, %30, %cst_11 {dimension_numbers = #tpu.dot_dimension_numbers<[2], [1], [1], [2], [0, 0, 0, 1, 1, 2], [0], [0]>} : vector<2x8x8xf32>, vector<2x8x8xf32>, vector<2x8x8xf32> -> vector<2x8x8xf32>
    "tpu.trace_stop"() : () -> ()
    %cst_12 = arith.constant dense<0.000000e+00> : vector<2x8xf32>
    %38 = vector.multi_reduction <add>, %36, %cst_12 [2] : vector<2x8x8xf32> to vector<2x8xf32>
    %39 = vector.shape_cast %38 : vector<2x8xf32> to vector<2x8x1xf32>
    %40 = tpu.reciprocal %39 {approx = true} : vector<2x8x1xf32> -> vector<2x8x1xf32>
    %41 = vector.broadcast %40 : vector<2x8x1xf32> to vector<2x8x8xf32>
    %42 = arith.mulf %37, %41 : vector<2x8x8xf32>
    %43 = vector.shape_cast %42 : vector<2x8x8xf32> to vector<16x8xf32>
    %44 = vector.extract_strided_slice %5 {offsets = [0, 16], sizes = [16, 8], strides = [1, 1]} : vector<16x96xf32> to vector<16x8xf32>
    %45 = vector.shape_cast %44 : vector<16x8xf32> to vector<2x8x8xf32>
    %46 = vector.extract_strided_slice %5 {offsets = [0, 48], sizes = [16, 8], strides = [1, 1]} : vector<16x96xf32> to vector<16x8xf32>
    %47 = vector.shape_cast %46 : vector<16x8xf32> to vector<2x8x8xf32>
    %48 = vector.extract_strided_slice %5 {offsets = [0, 80], sizes = [16, 8], strides = [1, 1]} : vector<16x96xf32> to vector<16x8xf32>
    %49 = vector.shape_cast %48 : vector<16x8xf32> to vector<2x8x8xf32>
    "tpu.trace_start"() <{level = 10 : i32, message = "bqd,bkd->bqk"}> : () -> ()
    %cst_13 = arith.constant dense<0.000000e+00> : vector<2x8x8xf32>
    %50 = tpu.matmul %45, %47, %cst_13 {dimension_numbers = #tpu.dot_dimension_numbers<[2], [2], [1], [1], [0, 0, 0, 1, 1, 1], [0], [0]>} : vector<2x8x8xf32>, vector<2x8x8xf32>, vector<2x8x8xf32> -> vector<2x8x8xf32>
    "tpu.trace_stop"() : () -> ()
    %cst_14 = arith.constant dense<0xFF800000> : vector<2x8xf32>
    %51 = vector.multi_reduction <maximumf>, %50, %cst_14 [2] : vector<2x8x8xf32> to vector<2x8xf32>
    %52 = vector.shape_cast %51 : vector<2x8xf32> to vector<2x8x1xf32>
    %53 = vector.broadcast %52 : vector<2x8x1xf32> to vector<2x8x8xf32>
    %54 = arith.subf %50, %53 : vector<2x8x8xf32>
    %55 = math.exp %54 : vector<2x8x8xf32>
    "tpu.trace_start"() <{level = 10 : i32, message = "bqk,bkd->bqd"}> : () -> ()
    %cst_15 = arith.constant dense<0.000000e+00> : vector<2x8x8xf32>
    %56 = tpu.matmul %55, %49, %cst_15 {dimension_numbers = #tpu.dot_dimension_numbers<[2], [1], [1], [2], [0, 0, 0, 1, 1, 2], [0], [0]>} : vector<2x8x8xf32>, vector<2x8x8xf32>, vector<2x8x8xf32> -> vector<2x8x8xf32>
    "tpu.trace_stop"() : () -> ()
    %cst_16 = arith.constant dense<0.000000e+00> : vector<2x8xf32>
    %57 = vector.multi_reduction <add>, %55, %cst_16 [2] : vector<2x8x8xf32> to vector<2x8xf32>
    %58 = vector.shape_cast %57 : vector<2x8xf32> to vector<2x8x1xf32>
    %59 = tpu.reciprocal %58 {approx = true} : vector<2x8x1xf32> -> vector<2x8x1xf32>
    %60 = vector.broadcast %59 : vector<2x8x1xf32> to vector<2x8x8xf32>
    %61 = arith.mulf %56, %60 : vector<2x8x8xf32>
    %62 = vector.shape_cast %61 : vector<2x8x8xf32> to vector<16x8xf32>
    %63 = vector.extract_strided_slice %5 {offsets = [0, 24], sizes = [16, 8], strides = [1, 1]} : vector<16x96xf32> to vector<16x8xf32>
    %64 = vector.shape_cast %63 : vector<16x8xf32> to vector<2x8x8xf32>
    %65 = vector.extract_strided_slice %5 {offsets = [0, 56], sizes = [16, 8], strides = [1, 1]} : vector<16x96xf32> to vector<16x8xf32>
    %66 = vector.shape_cast %65 : vector<16x8xf32> to vector<2x8x8xf32>
    %67 = vector.extract_strided_slice %5 {offsets = [0, 88], sizes = [16, 8], strides = [1, 1]} : vector<16x96xf32> to vector<16x8xf32>
    %68 = vector.shape_cast %67 : vector<16x8xf32> to vector<2x8x8xf32>
    "tpu.trace_start"() <{level = 10 : i32, message = "bqd,bkd->bqk"}> : () -> ()
    %cst_17 = arith.constant dense<0.000000e+00> : vector<2x8x8xf32>
    %69 = tpu.matmul %64, %66, %cst_17 {dimension_numbers = #tpu.dot_dimension_numbers<[2], [2], [1], [1], [0, 0, 0, 1, 1, 1], [0], [0]>} : vector<2x8x8xf32>, vector<2x8x8xf32>, vector<2x8x8xf32> -> vector<2x8x8xf32>
    "tpu.trace_stop"() : () -> ()
    %cst_18 = arith.constant dense<0xFF800000> : vector<2x8xf32>
    %70 = vector.multi_reduction <maximumf>, %69, %cst_18 [2] : vector<2x8x8xf32> to vector<2x8xf32>
    %71 = vector.shape_cast %70 : vector<2x8xf32> to vector<2x8x1xf32>
    %72 = vector.broadcast %71 : vector<2x8x1xf32> to vector<2x8x8xf32>
    %73 = arith.subf %69, %72 : vector<2x8x8xf32>
    %74 = math.exp %73 : vector<2x8x8xf32>
    "tpu.trace_start"() <{level = 10 : i32, message = "bqk,bkd->bqd"}> : () -> ()
    %cst_19 = arith.constant dense<0.000000e+00> : vector<2x8x8xf32>
    %75 = tpu.matmul %74, %68, %cst_19 {dimension_numbers = #tpu.dot_dimension_numbers<[2], [1], [1], [2], [0, 0, 0, 1, 1, 2], [0], [0]>} : vector<2x8x8xf32>, vector<2x8x8xf32>, vector<2x8x8xf32> -> vector<2x8x8xf32>
    "tpu.trace_stop"() : () -> ()
    %cst_20 = arith.constant dense<0.000000e+00> : vector<2x8xf32>
    %76 = vector.multi_reduction <add>, %74, %cst_20 [2] : vector<2x8x8xf32> to vector<2x8xf32>
    %77 = vector.shape_cast %76 : vector<2x8xf32> to vector<2x8x1xf32>
    %78 = tpu.reciprocal %77 {approx = true} : vector<2x8x1xf32> -> vector<2x8x1xf32>
    %79 = vector.broadcast %78 : vector<2x8x1xf32> to vector<2x8x8xf32>
    %80 = arith.mulf %75, %79 : vector<2x8x8xf32>
    %81 = vector.shape_cast %80 : vector<2x8x8xf32> to vector<16x8xf32>
    %82 = tpu.concatenate %24, %43, %62, %81 in 1 : vector<16x8xf32>, vector<16x8xf32>, vector<16x8xf32>, vector<16x8xf32> -> vector<16x32xf32>
    %c0_21 = arith.constant 0 : index
    %c0_22 = arith.constant 0 : index
    %83 = vector.load %arg4[%c0_21, %c0_22] : memref<32x32xf32, #tpu.memory_space<vmem>>, vector<32x32xf32>
    %cst_23 = arith.constant dense<0.000000e+00> : vector<16x32xf32>
    %84 = tpu.matmul %82, %83, %cst_23 {dimension_numbers = #tpu.dot_dimension_numbers<[1], [0], [0], [1], [0, 0, 1, 1], [], []>} : vector<16x32xf32>, vector<32x32xf32>, vector<16x32xf32> -> vector<16x32xf32>
    %c0_24 = arith.constant 0 : index
    %c0_25 = arith.constant 0 : index
    %85 = vector.load %arg5[%c0_24, %c0_25] : memref<1x32xf32, #tpu.memory_space<vmem>>, vector<1x32xf32>
    %86 = vector.broadcast %85 : vector<1x32xf32> to vector<16x32xf32>
    %87 = arith.addf %84, %86 : vector<16x32xf32>
    %88 = arith.addf %87, %0 : vector<16x32xf32>
    %cst_26 = arith.constant dense<0.000000e+00> : vector<16xf32>
    %89 = vector.multi_reduction <add>, %88, %cst_26 [1] : vector<16x32xf32> to vector<16xf32>
    %90 = vector.shape_cast %89 : vector<16xf32> to vector<16x1xf32>
    %cst_27 = arith.constant 3.200000e+01 : f32
    %91 = vector.broadcast %cst_27 : f32 to vector<16x1xf32>
    %92 = arith.divf %90, %91 : vector<16x1xf32>
    %93 = vector.broadcast %92 : vector<16x1xf32> to vector<16x32xf32>
    %94 = arith.subf %88, %93 : vector<16x32xf32>
    %95 = arith.mulf %94, %94 : vector<16x32xf32>
    %cst_28 = arith.constant dense<0.000000e+00> : vector<16xf32>
    %96 = vector.multi_reduction <add>, %95, %cst_28 [1] : vector<16x32xf32> to vector<16xf32>
    %97 = vector.shape_cast %96 : vector<16xf32> to vector<16x1xf32>
    %cst_29 = arith.constant 3.200000e+01 : f32
    %98 = vector.broadcast %cst_29 : f32 to vector<16x1xf32>
    %99 = arith.divf %97, %98 : vector<16x1xf32>
    %cst_30 = arith.constant 9.99999997E-7 : f32
    %100 = vector.broadcast %cst_30 : f32 to vector<16x1xf32>
    %101 = arith.addf %99, %100 : vector<16x1xf32>
    %102 = math.rsqrt %101 : vector<16x1xf32>
    %103 = vector.broadcast %102 : vector<16x1xf32> to vector<16x32xf32>
    %104 = arith.mulf %94, %103 : vector<16x32xf32>
    %c0_31 = arith.constant 0 : index
    %c0_32 = arith.constant 0 : index
    %105 = vector.load %arg6[%c0_31, %c0_32] : memref<1x32xf32, #tpu.memory_space<vmem>>, vector<1x32xf32>
    %106 = vector.broadcast %105 : vector<1x32xf32> to vector<16x32xf32>
    %107 = arith.mulf %104, %106 : vector<16x32xf32>
    %c0_33 = arith.constant 0 : index
    %c0_34 = arith.constant 0 : index
    %108 = vector.load %arg7[%c0_33, %c0_34] : memref<1x32xf32, #tpu.memory_space<vmem>>, vector<1x32xf32>
    %109 = vector.broadcast %108 : vector<1x32xf32> to vector<16x32xf32>
    %110 = arith.addf %107, %109 : vector<16x32xf32>
    %c0_35 = arith.constant 0 : index
    %c0_36 = arith.constant 0 : index
    %111 = vector.load %arg8[%c0_35, %c0_36] : memref<16x32xf32, #tpu.memory_space<vmem>>, vector<16x32xf32>
    tpu.vector_store %arg8[%c0_35, %c0_36], %110 {strides = array<i32>} : memref<16x32xf32, #tpu.memory_space<vmem>>, vector<16x32xf32>,
    return
  }
  func.func @transform_0(%arg0: i32) -> (i32, i32) {
    %c0_i32 = arith.constant 0 : i32
    %c0_i32_0 = arith.constant 0 : i32
    return %arg0, %c0_i32 : i32, i32
  }
  func.func @transform_1(%arg0: i32) -> (i32, i32) {
    %c0_i32 = arith.constant 0 : i32
    %c0_i32_0 = arith.constant 0 : i32
    %c0_i32_1 = arith.constant 0 : i32
    return %c0_i32, %c0_i32_0 : i32, i32
  }
  func.func @transform_2(%arg0: i32) -> (i32, i32) {
    %c0_i32 = arith.constant 0 : i32
    %c0_i32_0 = arith.constant 0 : i32
    %c0_i32_1 = arith.constant 0 : i32
    return %c0_i32, %c0_i32_0 : i32, i32
  }
  func.func @transform_3(%arg0: i32) -> (i32, i32) {
    %c0_i32 = arith.constant 0 : i32
    %c0_i32_0 = arith.constant 0 : i32
    %c0_i32_1 = arith.constant 0 : i32
    return %c0_i32, %c0_i32_0 : i32, i32
  }
  func.func @transform_4(%arg0: i32) -> (i32, i32) {
    %c0_i32 = arith.constant 0 : i32
    %c0_i32_0 = arith.constant 0 : i32
    %c0_i32_1 = arith.constant 0 : i32
    return %c0_i32, %c0_i32_0 : i32, i32
  }
  func.func @transform_5(%arg0: i32) -> (i32, i32) {
    %c0_i32 = arith.constant 0 : i32
    %c0_i32_0 = arith.constant 0 : i32
    %c0_i32_1 = arith.constant 0 : i32
    return %c0_i32, %c0_i32_0 : i32, i32
  }
  func.func @transform_6(%arg0: i32) -> (i32, i32) {
    %c0_i32 = arith.constant 0 : i32
    %c0_i32_0 = arith.constant 0 : i32
    %c0_i32_1 = arith.constant 0 : i32
    return %c0_i32, %c0_i32_0 : i32, i32
  }
  func.func @transform_7(%arg0: i32) -> (i32, i32) {
    %c0_i32 = arith.constant 0 : i32
    %c0_i32_0 = arith.constant 0 : i32
    return %arg0, %c0_i32 : i32, i32
  }
}

</mosaic_0001>

<bundles_post_ra>
// kernel: tpu_custom_call.1
= control target key start
LH: loop header
LB: loop body
LE: loop exit
PB: predicated region body
PF: predicated region fallthrough
CT: control target
= control target key end

     0   :  { %12 = vsyncpa [#allocation3], 0  ;;  %s1187_s0 = inlined_call_operand.hbm [shape: f32[16,32], index: 0, kind: input, shape index: {}]   ;;  %s1188_s1 = inlined_call_operand.hbm [shape: f32[32,96], index: 1, kind: input, shape index: {}]   ;;  %s1189_s2 = inlined_call_operand.vmem [shape: f32[1,96], index: 2, kind: input, shape index: {}]   ;;  %s1190_s3 = inlined_call_operand.hbm [shape: f32[32,32], index: 3, kind: input, shape index: {}]   ;;  %s1191_s4 = inlined_call_operand.vmem [shape: f32[1,32], index: 4, kind: input, shape index: {}]   ;;  %s1192_s5 = inlined_call_operand.vmem [shape: f32[1,32], index: 5, kind: input, shape index: {}]   ;;  %s1193_s6 = inlined_call_operand.vmem [shape: f32[1,32], index: 6, kind: input, shape index: {}]   ;;  %s1194_s7 = inlined_call_operand.hbm [shape: f32[16,32], index: 7, kind: output, shape index: {}]  }
   0x1   :  { %13 = vsyncpa [#allocation6], 0 }
   0x2   :  { %14 = vsyncpa [#allocation4], 0  ;;  %s32_s26 = sshll.u32 %s1188_s1, 4  ;;  %s991_s27 = smov [#allocation5]   ;;  %s33_s26 = int_to_ptr.hbm [resolvable:$true] %s32_s26 }
   0x3   :  { %s34_s28 = sshll.u32 %s991_s27, 4  ;;  %s19_s8 = sshll.u32 %s1187_s0, 4  ;;  %s35_s28 = int_to_ptr.vmem [resolvable:$true] %s34_s28  ;;  %s20_s8 = int_to_ptr.hbm [resolvable:$true] %s19_s8 }
   0x4   :  { %s992_s9 = smov 128   ;;  %s993_s10 = smov 8  }
   0x5   :  { %40 = dma.hbm_to_vmem [thread:$0]  %s33_s26, 512, %s35_s28, [#allocation6], %s992_s9, %s992_s9, %s993_s10  }
   0x6   :  { %s994_s11 = smov [#allocation2]   ;;  %s47_s1 = sshll.u32 %s1190_s3, 4  ;;  %s48_s1 = int_to_ptr.hbm [resolvable:$true] %s47_s1 }
   0x7   :  { %s21_s12 = sshll.u32 %s994_s11, 4  ;;  %s995_s0 = smov [#allocation7]   ;;  %s22_s12 = int_to_ptr.vmem [resolvable:$true] %s21_s12 }
   0x8   :  { %27 = dma.hbm_to_vmem [thread:$0]  %s20_s8, 256, %s22_s12, [#allocation3], %s992_s9, %s992_s9, %s993_s10  }
   0x9   :  { %s49_s15 = sshll.u32 %s995_s0, 4  ;;  %s50_s15 = int_to_ptr.vmem [resolvable:$true] %s49_s15 }
   0xa   :  { %55 = dma.hbm_to_vmem [thread:$0]  %s48_s1, 512, %s50_s15, [#allocation6], %s992_s9, %s992_s9, %s993_s10  }
   0xb   :  { %985 = dma.done.wait [#allocation3], 256  }
   0xc   :  { %986 = vsyncadd [#allocation3], 4294967040 }
   0xd   :  { %987 = dma.done.wait [#allocation6], 1024  }
   0xe   :  { %988 = vsyncadd [#allocation6], 4294966272  ;;  %v79_v0 = vld [vmem:[#allocation5 + $0x18] sm:$0xff]  ;;  %v78_v1 = vld [vmem:[#allocation5 + $0x10] sm:$0xff]  ;;  %vm84_vm0 = vcmask 261120   ;;  %s996_s17 = smov 88  }
   0xf   :  { %103 = vmatpush.msra.mxu0 %v79_v0  ;;  %v77_v2 = vld [vmem:[#allocation5 + $0x8] sm:$0xff]  ;;  %v76_v3 = vld [vmem:[#allocation5] sm:$0xff]  ;;  %v1069_v4 = vld [vmem:[#allocation2] sm:$0xff]  ;;  %s997_s18 = smov 96   ;;  %s998_s19 = smov 80   ;;  %vm117_vm1 = vcmask 64512  }
  0x10   :  { %v1073_v5 = vld [vmem:[#allocation2 + $0x8] sm:$0xff]  ;;  %v847_v6 = vld [vmem:[%s1189_s2] ss:$0 sm:$0xff]  ;;  %s999_s2 = smov 120   ;;  %s1000_s20 = smov 72   ;;  %vm659_vm2 = vcmask 130048  }
  0x11   :  { %104 = vmatpush.msra.mxu0 %v78_v1  ;;  %s1001_s21 = smov 112   ;;  %s1002_s22 = smov 104   ;;  %vm662_vm3 = vcmask 195584  }
  0x12   :  { %s1003_s23 = smov 56   ;;  %s1004_s24 = smov 64  }
  0x13   :  { %105 = vmatpush.msra.mxu0 %v77_v2  ;;  %s1005_s25 = smov 40   ;;  %s1006_s26 = smov 48  }
  0x14   :  { %s1007_s27 = smov 16   ;;  %s1008_s28 = smov 24  }
  0x15   :  { %106 = vmatpush.msra.mxu0 %v76_v3  ;;  %s775_s0 = sshll.u32 %s1194_s7, 4  ;;  %s776_s0 = int_to_ptr.hbm [resolvable:$true] %s775_s0 }
  0x16   :  { %789 = vmatmul.msk.f32.vlgmr.msra.gmra.mxu0 %vm84_vm0, %v1069_v4 }
  0x1e   :  { %790 = vmatmul.msk.f32.gmra.mxu0 %vm84_vm0, %v1073_v5 }
  0x93   :  { %v108_v7 = vpop.f32.mrf.mxu0 }
  0x94   :  { %v1080_v8 = vadd.f32 %v847_v6, %v108_v7 }
  0x96   :  { %245 = vrot.lane.b32.xlu2 %v1080_v8, %s996_s17  ;;  %115 = vrot.lane.b32.xlu0 %v1080_v8, %s997_s18 }
  0x9b   :  { %v111_v9 = vpop.f32.mrf.mxu0 }
  0x9c   :  { %v1084_v10 = vadd.f32 %v847_v6, %v111_v9 }
  0x9e   :  { %273 = vrot.lane.b32.xlu1 %v1084_v10, %s996_s17  ;;  %375 = vrot.lane.b32.xlu2 %v1080_v8, %s998_s19  ;;  %v842_v11 = vpack.i.bf16 %v1084_v10, %v1080_v8 }
  0x9f   :  { %143 = vrot.lane.b32.xlu0 %v1084_v10, %s997_s18 }
  0xa6   :  { %271 = vrot.lane.b32.xlu1 %v1084_v10, %s999_s2  ;;  %505 = vrot.lane.b32.xlu2 %v1080_v8, %s1000_s20 }
  0xa7   :  { %243 = vrot.lane.b32.xlu0 %v1080_v8, %s999_s2 }
  0xae   :  { %373 = vrot.lane.b32.xlu1 %v1080_v8, %s1001_s21  ;;  %401 = vrot.lane.b32.xlu2 %v1084_v10, %s1001_s21 }
  0xaf   :  { %503 = vrot.lane.b32.xlu0 %v1080_v8, %s1002_s22 }
  0xb6   :  { %403 = vrot.lane.b32.xlu1 %v1084_v10, %s998_s19  ;;  %843 = vrot.lane.b32.xlu2 %v842_v11, %s1003_s23 }
  0xb7   :  { %533 = vrot.lane.b32.xlu0 %v1084_v10, %s1000_s20 }
  0xbe   :  { %531 = vrot.lane.b32.xlu1 %v1084_v10, %s1002_s22 }
  0xc6   :  { %838 = vrot.lane.b32.xlu1 %v842_v11, %s1004_s24 }
  0xf0   :  { %v246_v12 = vpop.permute.xlu2 %245 }
  0xf8   :  { %v376_v13 = vpop.permute.xlu2 %375 }
 0x100   :  { %v506_v14 = vpop.permute.xlu2 %505 }
 0x108   :  { %v402_v15 = vpop.permute.xlu2 %401  ;;  %v116_v16 = vpop.permute.xlu0 %115 }
 0x109   :  { %791 = vmatpush.xpose.msk.msra.mxu1 %vm117_vm1, %v116_v16 }
 0x10c   :  { %792 = vmatmul.msk.f32.vlgmr.msra.gmra.mxu1 %vm117_vm1, %v1080_v8 }
 0x10d   :  { %797 = vmatpush.xpose.msk.msrb.mxu1 %vm117_vm1, %v246_v12 }
 0x110   :  { %v274_v17 = vpop.permute.xlu1 %273  ;;  %v1104_v18 = vpop.permute.xlu2 %843 }
 0x111   :  { %v846_v19 = vunpack.i.h.bf16 %v1104_v18  ;;  %v144_v20 = vpop.permute.xlu0 %143  ;;  %799 = vmatpush.xpose.msk.msra.mxu2 %vm117_vm1, %v274_v17  ;;  %v845_v53 = vunpack.i.l.bf16 %v1104_v18 }
 0x112   :  { %793 = vmatpush.xpose.msk.msrb.mxu0 %vm117_vm1, %v144_v20 }
 0x113   :  { %358 = vmatpush.msra.mxu1 %v846_v19 }
 0x115   :  { %803 = vmatpush.xpose.msk.msrb.mxu2 %vm117_vm1, %v376_v13  ;;  %794 = vmatmul.msk.f32.vlgmr.msrb.gmra.mxu0 %vm117_vm1, %v1084_v10 }
 0x118   :  { %v272_v21 = vpop.permute.xlu1 %271 }
 0x119   :  { %v244_v22 = vpop.permute.xlu0 %243  ;;  %800 = vmatmul.msk.f32.vlgmr.msra.gmra.mxu2 %vm117_vm1, %v272_v21 }
 0x11a   :  { %798 = vmatmul.msk.f32.vlgmr.msrb.gmra.mxu1 %vm117_vm1, %v244_v22  ;;  %809 = vmatpush.xpose.msk.msra.mxu2 %vm117_vm1, %v506_v14 }
 0x120   :  { %v374_v23 = vpop.permute.xlu1 %373 }
 0x121   :  { %v504_v24 = vpop.permute.xlu0 %503  ;;  %804 = vmatmul.msk.f32.vlgmr.msrb.gmra.mxu2 %vm117_vm1, %v374_v23 }
 0x128   :  { %v404_v25 = vpop.permute.xlu1 %403 }
 0x129   :  { %v534_v26 = vpop.permute.xlu0 %533  ;;  %805 = vmatpush.xpose.msk.msra.mxu0 %vm117_vm1, %v404_v25  ;;  %810 = vmatmul.msk.f32.vlgmr.msra.gmra.mxu2 %vm117_vm1, %v504_v24 }
 0x12c   :  { %806 = vmatmul.msk.f32.vlgmr.msra.gmra.mxu0 %vm117_vm1, %v402_v15 }
 0x12d   :  { %811 = vmatpush.xpose.msk.msrb.mxu0 %vm117_vm1, %v534_v26 }
 0x130   :  { %v532_v27 = vpop.permute.xlu1 %531 }
 0x134   :  { %812 = vmatmul.msk.f32.vlgmr.msrb.gmra.mxu0 %vm117_vm1, %v532_v27 }
 0x138   :  { %v839_v28 = vpop.permute.xlu1 %838 }
 0x139   :  { %v840_v29 = vunpack.i.l.bf16 %v839_v28  ;;  %v841_v30 = vunpack.i.h.bf16 %v839_v28 }
 0x13b   :  { %202 = vmatpush.msra.mxu3 %v840_v29 }
 0x13d   :  { %228 = vmatpush.msrb.mxu3 %v841_v30 }
 0x189   :  { %v139_v31 = vpop.f32.mrf.mxu1 }
 0x18a   :  { %v169_v32 = vsel %vm117_vm1, %v139_v31, -inf }
 0x18b   :  { %170 = vmax.xlane.f32.xlu2 %v169_v32 }
 0x192   :  { %v166_v33 = vpop.f32.mrf.mxu0 }
 0x193   :  { %v172_v34 = vsel %vm117_vm1, %v166_v33, -inf }
 0x194   :  { %173 = vmax.xlane.f32.xlu0 %v172_v34 }
 0x197   :  { %v268_v35 = vpop.f32.mrf.mxu1 }
 0x198   :  { %v299_v36 = vsel %vm117_vm1, %v268_v35, -inf }
 0x199   :  { %300 = vmax.xlane.f32.xlu1 %v299_v36 }
 0x19c   :  { %v296_v37 = vpop.f32.mrf.mxu2 }
 0x19d   :  { %v302_v38 = vsel %vm117_vm1, %v296_v37, -inf }
 0x19e   :  { %303 = vmax.xlane.f32.xlu0 %v302_v38 }
 0x1a3   :  { %571 = vrot.lane.b32.xlu2 %v1080_v8, %s1005_s25 }
 0x1a4   :  { %v1127_v41 = vpop.f32.mrf.mxu2 }
 0x1a5   :  { %v429_v46 = vsel %vm117_vm1, %v1127_v41, -inf }
 0x1a9   :  { %v426_v39 = vpop.f32.mrf.mxu0 }
 0x1aa   :  { %v432_v40 = vsel %vm117_vm1, %v426_v39, -inf }
 0x1ab   :  { %433 = vmax.xlane.f32.xlu0 %v432_v40 }
 0x1ac   :  { %v528_v44 = vpop.f32.mrf.mxu2 }
 0x1ad   :  { %v559_v45 = vsel %vm117_vm1, %v528_v44, -inf }
 0x1b1   :  { %v556_v42 = vpop.f32.mrf.mxu0 }
 0x1b2   :  { %441 = vrot.lane.b32.xlu1 %v1080_v8, %s1006_s26  ;;  %v562_v43 = vsel %vm117_vm1, %v556_v42, -inf }
 0x1b3   :  { %563 = vmax.xlane.f32.xlu0 %v562_v43 }
 0x1bb   :  { %560 = vmax.xlane.f32.xlu0 %v559_v45 }
 0x1cc   :  { %430 = vmax.xlane.f32.xlu2 %v429_v46 }
 0x1cf   :  { %597 = vrot.lane.b32.xlu0 %v1084_v10, %s1005_s25 }
 0x1e4   :  { %467 = vrot.lane.b32.xlu2 %v1084_v10, %s1006_s26 }
 0x1fe   :  { %v171_v47 = vpop.xlane.xlu2 %170 }
 0x1ff   :  { %v175_v48 = vsub.f32 %v139_v31, %v171_v47 }
 0x201   :  { %v177_v49 = vmul.f32 1.442695, %v175_v48 }
 0x203   :  { %851 = vpow2.f32 %v177_v49 }
 0x206   :  { %v572_v8 = vpop.permute.xlu2 %571 }
 0x207   :  { %v174_v50 = vpop.xlane.xlu0 %173 }
 0x208   :  { %v176_v51 = vsub.f32 %v166_v33, %v174_v50 }
 0x209   :  { %v1136_v52 = vpop.eup %851 }
 0x20a   :  { %v179_v54 = vmul.f32 1.442695, %v176_v51  ;;  %795 = vmatmul.msk.f32.vlgmr.msra.gmra.mxu3 %vm117_vm1, %v1136_v52  ;;  %v233_v29 = vsel %vm117_vm1, %v1136_v52, 0.0 }
 0x20b   :  { %332 = vmatpush.msra.mxu3 %v845_v53 }
 0x20c   :  { %853 = vpow2.f32 %v179_v54  ;;  %v301_v55 = vpop.xlane.xlu1 %300 }
 0x20d   :  { %v305_v56 = vsub.f32 %v268_v35, %v301_v55 }
 0x20f   :  { %v307_v57 = vmul.f32 1.442695, %v305_v56 }
 0x211   :  { %855 = vpow2.f32 %v307_v57  ;;  %v304_v58 = vpop.xlane.xlu0 %303 }
 0x212   :  { %v854_v59 = vpop.eup %853  ;;  %v306_v60 = vsub.f32 %v296_v37, %v304_v58 }
 0x213   :  { %796 = vmatmul.msk.f32.vlgmr.msrb.gmra.mxu3 %vm117_vm1, %v854_v59  ;;  %v236_v11 = vsel %vm117_vm1, %v854_v59, 0.0  ;;  %v668_v59 = vld [vmem:[#allocation7 + $0x18] sm:$0xff] }
 0x214   :  { %v309_v61 = vmul.f32 1.442695, %v306_v60  ;;  %v667_v60 = vld [vmem:[#allocation7 + $0x10] sm:$0xff]  ;;  %691 = vmatpush.msrb.mxu2 %v668_v59 }
 0x216   :  { %857 = vpow2.f32 %v309_v61  ;;  %v666_v61 = vld [vmem:[#allocation7 + $0x8] sm:$0xff]  ;;  %692 = vmatpush.msrb.mxu2 %v667_v60 }
 0x217   :  { %v856_v62 = vpop.eup %855 }
 0x218   :  { %v363_v63 = vsel %vm117_vm1, %v856_v62, 0.0  ;;  %693 = vmatpush.msrb.mxu2 %v666_v61 }
 0x219   :  { %364 = vadd.xlane.f32.xlu1 %v363_v63 }
 0x21b   :  { %801 = vmatmul.msk.f32.vlgmr.msra.gmra.mxu3 %vm117_vm1, %v856_v62  ;;  %v665_v62 = vld [vmem:[#allocation7] sm:$0xff] }
 0x21c   :  { %v858_v0 = vpop.eup %857  ;;  %694 = vmatpush.msrb.mxu2 %v665_v62 }
 0x21d   :  { %802 = vmatmul.msk.f32.vlgmr.msra.gmra.mxu1 %vm117_vm1, %v858_v0  ;;  %v366_v3 = vsel %vm117_vm1, %v858_v0, 0.0 }
 0x21e   :  { %v434_v1 = vpop.xlane.xlu0 %433 }
 0x21f   :  { %v436_v2 = vsub.f32 %v426_v39, %v434_v1 }
 0x221   :  { %v439_v6 = vmul.f32 1.442695, %v436_v2  ;;  %367 = vadd.xlane.f32.xlu1 %v366_v3 }
 0x223   :  { %859 = vpow2.f32 %v439_v6 }
 0x224   :  { %v442_v7 = vpop.permute.xlu1 %441 }
 0x225   :  { %462 = vmatpush.msrb.mxu3 %v442_v7 }
 0x226   :  { %v564_v9 = vpop.xlane.xlu0 %563 }
 0x227   :  { %592 = vmatpush.msra.mxu3 %v572_v8  ;;  %v566_v10 = vsub.f32 %v556_v42, %v564_v9 }
 0x229   :  { %v860_v12 = vpop.eup %859  ;;  %v569_v13 = vmul.f32 1.442695, %v566_v10  ;;  %237 = vadd.xlane.f32.xlu1 %v236_v11 }
 0x22a   :  { %v496_v14 = vsel %vm117_vm1, %v860_v12, 0.0 }
 0x22b   :  { %861 = vpow2.f32 %v569_v13  ;;  %497 = vadd.xlane.f32.xlu2 %v496_v14 }
 0x22e   :  { %v561_v15 = vpop.xlane.xlu0 %560 }
 0x22f   :  { %v565_v16 = vsub.f32 %v528_v44, %v561_v15 }
 0x231   :  { %v862_v17 = vpop.eup %861  ;;  %v567_v18 = vmul.f32 1.442695, %v565_v16  ;;  %v848_v16 = vld [vmem:[%s1191_s4] ss:$0 sm:$0xff] }
 0x232   :  { %v626_v19 = vsel %vm117_vm1, %v862_v17, 0.0 }
 0x233   :  { %863 = vpow2.f32 %v567_v18  ;;  %627 = vadd.xlane.f32.xlu1 %v626_v19 }
 0x239   :  { %v864_v20 = vpop.eup %863 }
 0x23a   :  { %v623_v21 = vsel %vm117_vm1, %v864_v20, 0.0 }
 0x23b   :  { %624 = vadd.xlane.f32.xlu0 %v623_v21 }
 0x23f   :  { %v431_v22 = vpop.xlane.xlu2 %430 }
 0x240   :  { %v435_v23 = vsub.f32 %v1127_v41, %v431_v22 }
 0x241   :  { %v598_v26 = vpop.permute.xlu0 %597 }
 0x242   :  { %v437_v24 = vmul.f32 1.442695, %v435_v23 }
 0x244   :  { %865 = vpow2.f32 %v437_v24 }
 0x247   :  { %v468_v25 = vpop.permute.xlu2 %467 }
 0x248   :  { %488 = vmatpush.msrb.mxu1 %v468_v25  ;;  %v1009_v25 = vmov 32.0  }
 0x249   :  { %808 = vmatmul.msk.f32.vlgmr.msrb.gmra.mxu1 %vm117_vm1, %v860_v12 }
 0x24a   :  { %v866_v27 = vpop.eup %865  ;;  %618 = vmatpush.msra.mxu1 %v598_v26 }
 0x24b   :  { %807 = vmatmul.msk.f32.vlgmr.msrb.gmra.mxu3 %vm117_vm1, %v866_v27  ;;  %v493_v28 = vsel %vm117_vm1, %v866_v27, 0.0 }
 0x24c   :  { %494 = vadd.xlane.f32.xlu2 %v493_v28 }
 0x251   :  { %814 = vmatmul.msk.f32.vlgmr.msra.gmra.mxu1 %vm117_vm1, %v862_v17 }
 0x253   :  { %813 = vmatmul.msk.f32.vlgmr.msra.gmra.mxu3 %vm117_vm1, %v864_v20 }
 0x254   :  { %234 = vadd.xlane.f32.xlu2 %v233_v29 }
 0x28c   :  { %v365_v30 = vpop.xlane.xlu1 %364 }
 0x28d   :  { %v204_v31 = vpop.f32.mrf.mxu3  ;;  %867 = vrcp.f32 %v365_v30 }
 0x293   :  { %v868_v35 = vpop.eup %867 }
 0x294   :  { %v368_v32 = vpop.xlane.xlu1 %367 }
 0x296   :  { %v230_v33 = vpop.f32.mrf.mxu3 }
 0x29a   :  { %v360_v40 = vpop.f32.mrf.mxu1 }
 0x29c   :  { %v238_v34 = vpop.xlane.xlu1 %237 }
 0x29d   :  { %869 = vrcp.f32 %v238_v34 }
 0x29e   :  { %871 = vrcp.f32 %v368_v32  ;;  %v334_v36 = vpop.f32.mrf.mxu3  ;;  %v498_v43 = vpop.xlane.xlu2 %497 }
 0x29f   :  { %v371_v37 = vmul.f32 %v868_v35, %v334_v36 }
 0x2a1   :  { %635 = vrot.lane.b32.xlu0 %v371_v37, %s993_s10 }
 0x2a3   :  { %v870_v38 = vpop.eup %869 }
 0x2a4   :  { %v872_v39 = vpop.eup %871  ;;  %v242_v41 = vmul.f32 %v870_v38, %v230_v33 }
 0x2a5   :  { %v372_v42 = vmul.f32 %v872_v39, %v360_v40 }
 0x2a6   :  { %v628_v44 = vpop.xlane.xlu1 %627 }
 0x2a7   :  { %873 = vrcp.f32 %v628_v44 }
 0x2a9   :  { %637 = vrot.lane.b32.xlu0 %v372_v42, %s993_s10 }
 0x2ad   :  { %v874_v47 = vpop.eup %873 }
 0x2ae   :  { %v625_v48 = vpop.xlane.xlu0 %624 }
 0x2bf   :  { %v495_v45 = vpop.xlane.xlu2 %494 }
 0x2c0   :  { %875 = vrcp.f32 %v495_v45 }
 0x2c1   :  { %877 = vrcp.f32 %v498_v43 }
 0x2c2   :  { %879 = vrcp.f32 %v625_v48 }
 0x2c6   :  { %v490_v46 = vpop.f32.mrf.mxu1  ;;  %v876_v49 = vpop.eup %875 }
 0x2c7   :  { %v878_v54 = vpop.eup %877  ;;  %v235_v63 = vpop.xlane.xlu2 %234 }
 0x2c8   :  { %v880_v55 = vpop.eup %879  ;;  %v502_v57 = vmul.f32 %v878_v54, %v490_v46  ;;  %881 = vrcp.f32 %v235_v63  ;;  %v849_v54 = vld [vmem:[%s1192_s5] ss:$0 sm:$0xff]  ;;  %s1010_s5 = smov [#allocation8]  }
 0x2c9   :  { %883 = vrcp.f32 %v1009_v25  ;;  %s773_s13 = sshll.u32 %s1010_s5, 4  ;;  %s774_s13 = int_to_ptr.vmem [resolvable:$true] %s773_s13 }
 0x2ce   :  { %v464_v50 = vpop.f32.mrf.mxu3  ;;  %v620_v51 = vpop.f32.mrf.mxu1 }
 0x2cf   :  { %v501_v52 = vmul.f32 %v876_v49, %v464_v50  ;;  %v632_v53 = vmul.f32 %v874_v47, %v620_v51  ;;  %v882_v1 = vpop.eup %881 }
 0x2d0   :  { %v241_v3 = vmul.f32 %v882_v1, %v204_v31  ;;  %v884_v26 = vpop.eup %883 }
 0x2d1   :  { %643 = vrot.lane.b32.xlu2 %v501_v52, %s1007_s27  ;;  %653 = vrot.lane.b32.xlu0 %v632_v53, %s1008_s28  ;;  %v711_v27 = vmul.f32 32.0, %v884_v26  ;;  %vm715_vm4 = vweird.f32 %v884_v26 }
 0x2d3   :  { %v712_v28 = vsub.f32 1.0, %v711_v27 }
 0x2d5   :  { %v713_v29 = vmul.f32 %v884_v26, %v712_v28 }
 0x2d6   :  { %v594_v56 = vpop.f32.mrf.mxu3 }
 0x2d7   :  { %v631_v58 = vmul.f32 %v880_v55, %v594_v56  ;;  %v714_v30 = vadd.f32 %v884_v26, %v713_v29 }
 0x2d9   :  { %645 = vrot.lane.b32.xlu2 %v502_v57, %s1007_s27  ;;  %651 = vrot.lane.b32.xlu1 %v631_v58, %s1008_s28  ;;  %v716_v31 = vsel %vm715_vm4, %v884_v26, %v714_v30  ;;  %v850_v58 = vld [vmem:[%s1193_s6] ss:$0 sm:$0xff] }
 0x313   :  { %v636_v0 = vpop.permute.xlu0 %635 }
 0x314   :  { %v657_v7 = vsel %vm117_vm1, %v241_v3, %v636_v0 }
 0x31b   :  { %v638_v6 = vpop.permute.xlu0 %637 }
 0x31c   :  { %v658_v13 = vsel %vm117_vm1, %v242_v41, %v638_v6 }
 0x32b   :  { %v644_v2 = vpop.permute.xlu2 %643 }
 0x32c   :  { %v660_v8 = vsel %vm659_vm2, %v657_v7, %v644_v2 }
 0x333   :  { %v646_v11 = vpop.permute.xlu2 %645 }
 0x334   :  { %v661_v14 = vsel %vm659_vm2, %v658_v13, %v646_v11 }
 0x343   :  { %v654_v12 = vpop.permute.xlu0 %653 }
 0x344   :  { %v664_v15 = vsel %vm662_vm3, %v661_v14, %v654_v12 }
 0x34b   :  { %v652_v9 = vpop.permute.xlu1 %651 }
 0x34c   :  { %v663_v10 = vsel %vm662_vm3, %v660_v8, %v652_v9 }
 0x34d   :  { %815 = vmatmul.msk.f32.vlgmr.msrb.gmra.mxu2 %vm84_vm0, %v663_v10 }
 0x355   :  { %816 = vmatmul.msk.f32.gmra.mxu2 %vm84_vm0, %v664_v15 }
 0x3d0   :  { %v696_v17 = vpop.f32.mrf.mxu2 }
 0x3d1   :  { %v697_v18 = vadd.f32 %v848_v16, %v696_v17 }
 0x3d3   :  { %v702_v19 = vadd.f32 %v697_v18, %v1069_v4 }
 0x3d5   :  { %v704_v20 = vsel %vm84_vm0, %v702_v19, 0.0 }
 0x3d6   :  { %705 = vadd.xlane.f32.xlu1 %v704_v20 }
 0x3d8   :  { %v699_v21 = vpop.f32.mrf.mxu2 }
 0x3d9   :  { %v700_v22 = vadd.f32 %v848_v16, %v699_v21 }
 0x3db   :  { %v703_v23 = vadd.f32 %v700_v22, %v1073_v5 }
 0x3dd   :  { %v707_v24 = vsel %vm84_vm0, %v703_v23, 0.0 }
 0x3de   :  { %708 = vadd.xlane.f32.xlu2 %v707_v24 }
 0x449   :  { %v706_v4 = vpop.xlane.xlu1 %705 }
 0x44a   :  { %v717_v32 = vmul.f32 %v716_v31, %v706_v4 }
 0x44c   :  { %v719_v33 = vsub.f32 %v702_v19, %v717_v32 }
 0x44e   :  { %v721_v34 = vmul.f32 %v719_v33, %v719_v33 }
 0x450   :  { %v723_v35 = vsel %vm84_vm0, %v721_v34, 0.0 }
 0x451   :  { %724 = vadd.xlane.f32.xlu0 %v723_v35  ;;  %v709_v5 = vpop.xlane.xlu2 %708 }
 0x452   :  { %v718_v36 = vmul.f32 %v716_v31, %v709_v5 }
 0x454   :  { %v720_v37 = vsub.f32 %v703_v23, %v718_v36 }
 0x456   :  { %v722_v38 = vmul.f32 %v720_v37, %v720_v37 }
 0x458   :  { %v726_v39 = vsel %vm84_vm0, %v722_v38, 0.0 }
 0x459   :  { %727 = vadd.xlane.f32.xlu1 %v726_v39 }
 0x4c4   :  { %v725_v40 = vpop.xlane.xlu0 %724 }
 0x4c5   :  { %v729_v41 = vmul.f32 %v725_v40, %v716_v31 }
 0x4c7   :  { %v731_v42 = vadd.f32 1e-06, %v729_v41 }
 0x4c9   :  { %885 = vrsqrt.f32 %v731_v42  ;;  %vm739_vm6 = vweird.f32 %v731_v42 }
 0x4cc   :  { %v728_v43 = vpop.xlane.xlu1 %727 }
 0x4cd   :  { %v730_v44 = vmul.f32 %v728_v43, %v716_v31 }
 0x4cf   :  { %v886_v45 = vpop.eup %885  ;;  %v732_v46 = vadd.f32 1e-06, %v730_v44 }
 0x4d0   :  { %v734_v47 = vmul.f32 %v886_v45, %v731_v42  ;;  %vm740_vm5 = vweird.f32 %v886_v45 }
 0x4d1   :  { %887 = vrsqrt.f32 %v732_v46  ;;  %vm741_vm7 = vmor %vm739_vm6, %vm740_vm5  ;;  %vm749_vm9 = vweird.f32 %v732_v46 }
 0x4d2   :  { %v735_v48 = vmul.f32 %v886_v45, %v734_v47 }
 0x4d4   :  { %v736_v49 = vmul.f32 0.5, %v735_v48 }
 0x4d6   :  { %v737_v50 = vsub.f32 1.5, %v736_v49 }
 0x4d7   :  { %v888_v51 = vpop.eup %887 }
 0x4d8   :  { %v738_v52 = vmul.f32 %v886_v45, %v737_v50  ;;  %v744_v53 = vmul.f32 %v888_v51, %v732_v46  ;;  %vm750_vm8 = vweird.f32 %v888_v51 }
 0x4d9   :  { %vm751_vm10 = vmor %vm749_vm9, %vm750_vm8 }
 0x4da   :  { %v742_v55 = vsel %vm741_vm7, %v886_v45, %v738_v52  ;;  %v745_v56 = vmul.f32 %v888_v51, %v744_v53 }
 0x4db   :  { %v753_v57 = vmul.f32 %v742_v55, %v719_v33 }
 0x4dc   :  { %v746_v59 = vmul.f32 0.5, %v745_v56 }
 0x4dd   :  { %v759_v60 = vmul.f32 %v849_v54, %v753_v57 }
 0x4de   :  { %v747_v61 = vsub.f32 1.5, %v746_v59 }
 0x4df   :  { %v765_v62 = vadd.f32 %v850_v58, %v759_v60 }
 0x4e0   :  { %v748_v63 = vmul.f32 %v888_v51, %v747_v61 }
 0x4e1   :  { %767 = vst.msk [vmem:[#allocation8] sm:$0xff] %vm84_vm0, %v765_v62 }
 0x4e2   :  { %v752_v0 = vsel %vm751_vm10, %v888_v51, %v748_v63 }
 0x4e3   :  { %v754_v1 = vmul.f32 %v752_v0, %v720_v37 }
 0x4e5   :  { %v760_v2 = vmul.f32 %v849_v54, %v754_v1 }
 0x4e7   :  { %v766_v3 = vadd.f32 %v850_v58, %v760_v2 }
 0x4e9   :  { %768 = vst.msk [vmem:[#allocation8 + $0x8] sm:$0xff] %vm84_vm0, %v766_v3 }
 0x4ea   :  { %781 = dma.vmem_to_hbm [thread:$0]  %s774_s13, 256, %s776_s0, [#allocation4], %s992_s9, %s992_s9, %s993_s10  }
 0x4eb   :  { %989 = dma.done.wait [#allocation4], 256  }
 0x4ec   :  { %990 = vsyncadd [#allocation4], 4294967040 }
 0x4ed   :  { %786 = vsyncpa [#allocation3], 1 }
 0x4ee   :  { %787 = vsyncpa [#allocation6], 1 }
 0x4ef   :  { %788 = vsyncpa [#allocation4], 1 }

// kernel: tpu_custom_call.1
= control target key start
LH: loop header
LB: loop body
LE: loop exit
PB: predicated region body
PF: predicated region fallthrough
CT: control target
= control target key end

     0   :  { %12 = vsyncpa [#allocation3], 0  ;;  %s1187_s0 = inlined_call_operand.hbm [shape: f32[16,32], index: 0, kind: input, shape index: {}]   ;;  %s1188_s1 = inlined_call_operand.hbm [shape: f32[32,96], index: 1, kind: input, shape index: {}]   ;;  %s1189_s2 = inlined_call_operand.vmem [shape: f32[1,96], index: 2, kind: input, shape index: {}]   ;;  %s1190_s3 = inlined_call_operand.hbm [shape: f32[32,32], index: 3, kind: input, shape index: {}]   ;;  %s1191_s4 = inlined_call_operand.vmem [shape: f32[1,32], index: 4, kind: input, shape index: {}]   ;;  %s1192_s5 = inlined_call_operand.vmem [shape: f32[1,32], index: 5, kind: input, shape index: {}]   ;;  %s1193_s6 = inlined_call_operand.vmem [shape: f32[1,32], index: 6, kind: input, shape index: {}]   ;;  %s1194_s7 = inlined_call_operand.hbm [shape: f32[16,32], index: 7, kind: output, shape index: {}]  }
   0x1   :  { %13 = vsyncpa [#allocation6], 0 }
   0x2   :  { %14 = vsyncpa [#allocation4], 0  ;;  %s32_s26 = sshll.u32 %s1188_s1, 4  ;;  %s991_s27 = smov [#allocation5]   ;;  %s33_s26 = int_to_ptr.hbm [resolvable:$true] %s32_s26 }
   0x3   :  { %s34_s28 = sshll.u32 %s991_s27, 4  ;;  %s19_s8 = sshll.u32 %s1187_s0, 4  ;;  %s35_s28 = int_to_ptr.vmem [resolvable:$true] %s34_s28  ;;  %s20_s8 = int_to_ptr.hbm [resolvable:$true] %s19_s8 }
   0x4   :  { %s992_s9 = smov 128   ;;  %s993_s10 = smov 8  }
   0x5   :  { %40 = dma.hbm_to_vmem [thread:$0]  %s33_s26, 512, %s35_s28, [#allocation6], %s992_s9, %s992_s9, %s993_s10  }
   0x6   :  { %s994_s11 = smov [#allocation2]   ;;  %s47_s1 = sshll.u32 %s1190_s3, 4  ;;  %s48_s1 = int_to_ptr.hbm [resolvable:$true] %s47_s1 }
   0x7   :  { %s21_s12 = sshll.u32 %s994_s11, 4  ;;  %s995_s0 = smov [#allocation7]   ;;  %s22_s12 = int_to_ptr.vmem [resolvable:$true] %s21_s12 }
   0x8   :  { %27 = dma.hbm_to_vmem [thread:$0]  %s20_s8, 256, %s22_s12, [#allocation3], %s992_s9, %s992_s9, %s993_s10  }
   0x9   :  { %s49_s15 = sshll.u32 %s995_s0, 4  ;;  %s50_s15 = int_to_ptr.vmem [resolvable:$true] %s49_s15 }
   0xa   :  { %55 = dma.hbm_to_vmem [thread:$0]  %s48_s1, 512, %s50_s15, [#allocation6], %s992_s9, %s992_s9, %s993_s10  }
   0xb   :  { %985 = dma.done.wait [#allocation3], 256  }
   0xc   :  { %986 = vsyncadd [#allocation3], 4294967040 }
   0xd   :  { %987 = dma.done.wait [#allocation6], 1024  }
   0xe   :  { %988 = vsyncadd [#allocation6], 4294966272  ;;  %v79_v0 = vld [vmem:[#allocation5 + $0x18] sm:$0xff]  ;;  %v78_v1 = vld [vmem:[#allocation5 + $0x10] sm:$0xff]  ;;  %vm84_vm0 = vcmask 261120   ;;  %s996_s17 = smov 88  }
   0xf   :  { %103 = vmatpush.msra.mxu0 %v79_v0  ;;  %v77_v2 = vld [vmem:[#allocation5 + $0x8] sm:$0xff]  ;;  %v76_v3 = vld [vmem:[#allocation5] sm:$0xff]  ;;  %v1069_v4 = vld [vmem:[#allocation2] sm:$0xff]  ;;  %s997_s18 = smov 96   ;;  %s998_s19 = smov 80   ;;  %vm117_vm1 = vcmask 64512  }
  0x10   :  { %v1073_v5 = vld [vmem:[#allocation2 + $0x8] sm:$0xff]  ;;  %v847_v6 = vld [vmem:[%s1189_s2] ss:$0 sm:$0xff]  ;;  %s999_s2 = smov 120   ;;  %s1000_s20 = smov 72   ;;  %vm659_vm2 = vcmask 130048  }
  0x11   :  { %104 = vmatpush.msra.mxu0 %v78_v1  ;;  %s1001_s21 = smov 112   ;;  %s1002_s22 = smov 104   ;;  %vm662_vm3 = vcmask 195584  }
  0x12   :  { %s1003_s23 = smov 56   ;;  %s1004_s24 = smov 64  }
  0x13   :  { %105 = vmatpush.msra.mxu0 %v77_v2  ;;  %s1005_s25 = smov 40   ;;  %s1006_s26 = smov 48  }
  0x14   :  { %s1007_s27 = smov 16   ;;  %s1008_s28 = smov 24  }
  0x15   :  { %106 = vmatpush.msra.mxu0 %v76_v3  ;;  %s775_s0 = sshll.u32 %s1194_s7, 4  ;;  %s776_s0 = int_to_ptr.hbm [resolvable:$true] %s775_s0 }
  0x16   :  { %789 = vmatmul.msk.f32.vlgmr.msra.gmra.mxu0 %vm84_vm0, %v1069_v4 }
  0x1e   :  { %790 = vmatmul.msk.f32.gmra.mxu0 %vm84_vm0, %v1073_v5 }
  0x93   :  { %v108_v7 = vpop.f32.mrf.mxu0 }
  0x94   :  { %v1080_v8 = vadd.f32 %v847_v6, %v108_v7 }
  0x96   :  { %245 = vrot.lane.b32.xlu2 %v1080_v8, %s996_s17  ;;  %115 = vrot.lane.b32.xlu0 %v1080_v8, %s997_s18 }
  0x9b   :  { %v111_v9 = vpop.f32.mrf.mxu0 }
  0x9c   :  { %v1084_v10 = vadd.f32 %v847_v6, %v111_v9 }
  0x9e   :  { %273 = vrot.lane.b32.xlu1 %v1084_v10, %s996_s17  ;;  %375 = vrot.lane.b32.xlu2 %v1080_v8, %s998_s19  ;;  %v842_v11 = vpack.i.bf16 %v1084_v10, %v1080_v8 }
  0x9f   :  { %143 = vrot.lane.b32.xlu0 %v1084_v10, %s997_s18 }
  0xa6   :  { %271 = vrot.lane.b32.xlu1 %v1084_v10, %s999_s2  ;;  %505 = vrot.lane.b32.xlu2 %v1080_v8, %s1000_s20 }
  0xa7   :  { %243 = vrot.lane.b32.xlu0 %v1080_v8, %s999_s2 }
  0xae   :  { %373 = vrot.lane.b32.xlu1 %v1080_v8, %s1001_s21  ;;  %401 = vrot.lane.b32.xlu2 %v1084_v10, %s1001_s21 }
  0xaf   :  { %503 = vrot.lane.b32.xlu0 %v1080_v8, %s1002_s22 }
  0xb6   :  { %403 = vrot.lane.b32.xlu1 %v1084_v10, %s998_s19  ;;  %843 = vrot.lane.b32.xlu2 %v842_v11, %s1003_s23 }
  0xb7   :  { %533 = vrot.lane.b32.xlu0 %v1084_v10, %s1000_s20 }
  0xbe   :  { %531 = vrot.lane.b32.xlu1 %v1084_v10, %s1002_s22 }
  0xc6   :  { %838 = vrot.lane.b32.xlu1 %v842_v11, %s1004_s24 }
  0xf0   :  { %v246_v12 = vpop.permute.xlu2 %245 }
  0xf8   :  { %v376_v13 = vpop.permute.xlu2 %375 }
 0x100   :  { %v506_v14 = vpop.permute.xlu2 %505 }
 0x108   :  { %v402_v15 = vpop.permute.xlu2 %401  ;;  %v116_v16 = vpop.permute.xlu0 %115 }
 0x109   :  { %791 = vmatpush.xpose.msk.msra.mxu1 %vm117_vm1, %v116_v16 }
 0x10c   :  { %792 = vmatmul.msk.f32.vlgmr.msra.gmra.mxu1 %vm117_vm1, %v1080_v8 }
 0x10d   :  { %797 = vmatpush.xpose.msk.msrb.mxu1 %vm117_vm1, %v246_v12 }
 0x110   :  { %v274_v17 = vpop.permute.xlu1 %273  ;;  %v1104_v18 = vpop.permute.xlu2 %843 }
 0x111   :  { %v846_v19 = vunpack.i.h.bf16 %v1104_v18  ;;  %v144_v20 = vpop.permute.xlu0 %143  ;;  %799 = vmatpush.xpose.msk.msra.mxu2 %vm117_vm1, %v274_v17  ;;  %v845_v53 = vunpack.i.l.bf16 %v1104_v18 }
 0x112   :  { %793 = vmatpush.xpose.msk.msrb.mxu0 %vm117_vm1, %v144_v20 }
 0x113   :  { %358 = vmatpush.msra.mxu1 %v846_v19 }
 0x115   :  { %803 = vmatpush.xpose.msk.msrb.mxu2 %vm117_vm1, %v376_v13  ;;  %794 = vmatmul.msk.f32.vlgmr.msrb.gmra.mxu0 %vm117_vm1, %v1084_v10 }
 0x118   :  { %v272_v21 = vpop.permute.xlu1 %271 }
 0x119   :  { %v244_v22 = vpop.permute.xlu0 %243  ;;  %800 = vmatmul.msk.f32.vlgmr.msra.gmra.mxu2 %vm117_vm1, %v272_v21 }
 0x11a   :  { %798 = vmatmul.msk.f32.vlgmr.msrb.gmra.mxu1 %vm117_vm1, %v244_v22  ;;  %809 = vmatpush.xpose.msk.msra.mxu2 %vm117_vm1, %v506_v14 }
 0x120   :  { %v374_v23 = vpop.permute.xlu1 %373 }
 0x121   :  { %v504_v24 = vpop.permute.xlu0 %503  ;;  %804 = vmatmul.msk.f32.vlgmr.msrb.gmra.mxu2 %vm117_vm1, %v374_v23 }
 0x128   :  { %v404_v25 = vpop.permute.xlu1 %403 }
 0x129   :  { %v534_v26 = vpop.permute.xlu0 %533  ;;  %805 = vmatpush.xpose.msk.msra.mxu0 %vm117_vm1, %v404_v25  ;;  %810 = vmatmul.msk.f32.vlgmr.msra.gmra.mxu2 %vm117_vm1, %v504_v24 }
 0x12c   :  { %806 = vmatmul.msk.f32.vlgmr.msra.gmra.mxu0 %vm117_vm1, %v402_v15 }
 0x12d   :  { %811 = vmatpush.xpose.msk.msrb.mxu0 %vm117_vm1, %v534_v26 }
 0x130   :  { %v532_v27 = vpop.permute.xlu1 %531 }
 0x134   :  { %812 = vmatmul.msk.f32.vlgmr.msrb.gmra.mxu0 %vm117_vm1, %v532_v27 }
 0x138   :  { %v839_v28 = vpop.permute.xlu1 %838 }
 0x139   :  { %v840_v29 = vunpack.i.l.bf16 %v839_v28  ;;  %v841_v30 = vunpack.i.h.bf16 %v839_v28 }
 0x13b   :  { %202 = vmatpush.msra.mxu3 %v840_v29 }
 0x13d   :  { %228 = vmatpush.msrb.mxu3 %v841_v30 }
 0x189   :  { %v139_v31 = vpop.f32.mrf.mxu1 }
 0x18a   :  { %v169_v32 = vsel %vm117_vm1, %v139_v31, -inf }
 0x18b   :  { %170 = vmax.xlane.f32.xlu2 %v169_v32 }
 0x192   :  { %v166_v33 = vpop.f32.mrf.mxu0 }
 0x193   :  { %v172_v34 = vsel %vm117_vm1, %v166_v33, -inf }
 0x194   :  { %173 = vmax.xlane.f32.xlu0 %v172_v34 }
 0x197   :  { %v268_v35 = vpop.f32.mrf.mxu1 }
 0x198   :  { %v299_v36 = vsel %vm117_vm1, %v268_v35, -inf }
 0x199   :  { %300 = vmax.xlane.f32.xlu1 %v299_v36 }
 0x19c   :  { %v296_v37 = vpop.f32.mrf.mxu2 }
 0x19d   :  { %v302_v38 = vsel %vm117_vm1, %v296_v37, -inf }
 0x19e   :  { %303 = vmax.xlane.f32.xlu0 %v302_v38 }
 0x1a3   :  { %571 = vrot.lane.b32.xlu2 %v1080_v8, %s1005_s25 }
 0x1a4   :  { %v1127_v41 = vpop.f32.mrf.mxu2 }
 0x1a5   :  { %v429_v46 = vsel %vm117_vm1, %v1127_v41, -inf }
 0x1a9   :  { %v426_v39 = vpop.f32.mrf.mxu0 }
 0x1aa   :  { %v432_v40 = vsel %vm117_vm1, %v426_v39, -inf }
 0x1ab   :  { %433 = vmax.xlane.f32.xlu0 %v432_v40 }
 0x1ac   :  { %v528_v44 = vpop.f32.mrf.mxu2 }
 0x1ad   :  { %v559_v45 = vsel %vm117_vm1, %v528_v44, -inf }
 0x1b1   :  { %v556_v42 = vpop.f32.mrf.mxu0 }
 0x1b2   :  { %441 = vrot.lane.b32.xlu1 %v1080_v8, %s1006_s26  ;;  %v562_v43 = vsel %vm117_vm1, %v556_v42, -inf }
 0x1b3   :  { %563 = vmax.xlane.f32.xlu0 %v562_v43 }
 0x1bb   :  { %560 = vmax.xlane.f32.xlu0 %v559_v45 }
 0x1cc   :  { %430 = vmax.xlane.f32.xlu2 %v429_v46 }
 0x1cf   :  { %597 = vrot.lane.b32.xlu0 %v1084_v10, %s1005_s25 }
 0x1e4   :  { %467 = vrot.lane.b32.xlu2 %v1084_v10, %s1006_s26 }
 0x1fe   :  { %v171_v47 = vpop.xlane.xlu2 %170 }
 0x1ff   :  { %v175_v48 = vsub.f32 %v139_v31, %v171_v47 }
 0x201   :  { %v177_v49 = vmul.f32 1.442695, %v175_v48 }
 0x203   :  { %851 = vpow2.f32 %v177_v49 }
 0x206   :  { %v572_v8 = vpop.permute.xlu2 %571 }
 0x207   :  { %v174_v50 = vpop.xlane.xlu0 %173 }
 0x208   :  { %v176_v51 = vsub.f32 %v166_v33, %v174_v50 }
 0x209   :  { %v1136_v52 = vpop.eup %851 }
 0x20a   :  { %v179_v54 = vmul.f32 1.442695, %v176_v51  ;;  %795 = vmatmul.msk.f32.vlgmr.msra.gmra.mxu3 %vm117_vm1, %v1136_v52  ;;  %v233_v29 = vsel %vm117_vm1, %v1136_v52, 0.0 }
 0x20b   :  { %332 = vmatpush.msra.mxu3 %v845_v53 }
 0x20c   :  { %853 = vpow2.f32 %v179_v54  ;;  %v301_v55 = vpop.xlane.xlu1 %300 }
 0x20d   :  { %v305_v56 = vsub.f32 %v268_v35, %v301_v55 }
 0x20f   :  { %v307_v57 = vmul.f32 1.442695, %v305_v56 }
 0x211   :  { %855 = vpow2.f32 %v307_v57  ;;  %v304_v58 = vpop.xlane.xlu0 %303 }
 0x212   :  { %v854_v59 = vpop.eup %853  ;;  %v306_v60 = vsub.f32 %v296_v37, %v304_v58 }
 0x213   :  { %796 = vmatmul.msk.f32.vlgmr.msrb.gmra.mxu3 %vm117_vm1, %v854_v59  ;;  %v236_v11 = vsel %vm117_vm1, %v854_v59, 0.0  ;;  %v668_v59 = vld [vmem:[#allocation7 + $0x18] sm:$0xff] }
 0x214   :  { %v309_v61 = vmul.f32 1.442695, %v306_v60  ;;  %v667_v60 = vld [vmem:[#allocation7 + $0x10] sm:$0xff]  ;;  %691 = vmatpush.msrb.mxu2 %v668_v59 }
 0x216   :  { %857 = vpow2.f32 %v309_v61  ;;  %v666_v61 = vld [vmem:[#allocation7 + $0x8] sm:$0xff]  ;;  %692 = vmatpush.msrb.mxu2 %v667_v60 }
 0x217   :  { %v856_v62 = vpop.eup %855 }
 0x218   :  { %v363_v63 = vsel %vm117_vm1, %v856_v62, 0.0  ;;  %693 = vmatpush.msrb.mxu2 %v666_v61 }
 0x219   :  { %364 = vadd.xlane.f32.xlu1 %v363_v63 }
 0x21b   :  { %801 = vmatmul.msk.f32.vlgmr.msra.gmra.mxu3 %vm117_vm1, %v856_v62  ;;  %v665_v62 = vld [vmem:[#allocation7] sm:$0xff] }
 0x21c   :  { %v858_v0 = vpop.eup %857  ;;  %694 = vmatpush.msrb.mxu2 %v665_v62 }
 0x21d   :  { %802 = vmatmul.msk.f32.vlgmr.msra.gmra.mxu1 %vm117_vm1, %v858_v0  ;;  %v366_v3 = vsel %vm117_vm1, %v858_v0, 0.0 }
 0x21e   :  { %v434_v1 = vpop.xlane.xlu0 %433 }
 0x21f   :  { %v436_v2 = vsub.f32 %v426_v39, %v434_v1 }
 0x221   :  { %v439_v6 = vmul.f32 1.442695, %v436_v2  ;;  %367 = vadd.xlane.f32.xlu1 %v366_v3 }
 0x223   :  { %859 = vpow2.f32 %v439_v6 }
 0x224   :  { %v442_v7 = vpop.permute.xlu1 %441 }
 0x225   :  { %462 = vmatpush.msrb.mxu3 %v442_v7 }
 0x226   :  { %v564_v9 = vpop.xlane.xlu0 %563 }
 0x227   :  { %592 = vmatpush.msra.mxu3 %v572_v8  ;;  %v566_v10 = vsub.f32 %v556_v42, %v564_v9 }
 0x229   :  { %v860_v12 = vpop.eup %859  ;;  %v569_v13 = vmul.f32 1.442695, %v566_v10  ;;  %237 = vadd.xlane.f32.xlu1 %v236_v11 }
 0x22a   :  { %v496_v14 = vsel %vm117_vm1, %v860_v12, 0.0 }
 0x22b   :  { %861 = vpow2.f32 %v569_v13  ;;  %497 = vadd.xlane.f32.xlu2 %v496_v14 }
 0x22e   :  { %v561_v15 = vpop.xlane.xlu0 %560 }
 0x22f   :  { %v565_v16 = vsub.f32 %v528_v44, %v561_v15 }
 0x231   :  { %v862_v17 = vpop.eup %861  ;;  %v567_v18 = vmul.f32 1.442695, %v565_v16  ;;  %v848_v16 = vld [vmem:[%s1191_s4] ss:$0 sm:$0xff] }
 0x232   :  { %v626_v19 = vsel %vm117_vm1, %v862_v17, 0.0 }
 0x233   :  { %863 = vpow2.f32 %v567_v18  ;;  %627 = vadd.xlane.f32.xlu1 %v626_v19 }
 0x239   :  { %v864_v20 = vpop.eup %863 }
 0x23a   :  { %v623_v21 = vsel %vm117_vm1, %v864_v20, 0.0 }
 0x23b   :  { %624 = vadd.xlane.f32.xlu0 %v623_v21 }
 0x23f   :  { %v431_v22 = vpop.xlane.xlu2 %430 }
 0x240   :  { %v435_v23 = vsub.f32 %v1127_v41, %v431_v22 }
 0x241   :  { %v598_v26 = vpop.permute.xlu0 %597 }
 0x242   :  { %v437_v24 = vmul.f32 1.442695, %v435_v23 }
 0x244   :  { %865 = vpow2.f32 %v437_v24 }
 0x247   :  { %v468_v25 = vpop.permute.xlu2 %467 }
 0x248   :  { %488 = vmatpush.msrb.mxu1 %v468_v25  ;;  %v1009_v25 = vmov 32.0  }
 0x249   :  { %808 = vmatmul.msk.f32.vlgmr.msrb.gmra.mxu1 %vm117_vm1, %v860_v12 }
 0x24a   :  { %v866_v27 = vpop.eup %865  ;;  %618 = vmatpush.msra.mxu1 %v598_v26 }
 0x24b   :  { %807 = vmatmul.msk.f32.vlgmr.msrb.gmra.mxu3 %vm117_vm1, %v866_v27  ;;  %v493_v28 = vsel %vm117_vm1, %v866_v27, 0.0 }
 0x24c   :  { %494 = vadd.xlane.f32.xlu2 %v493_v28 }
 0x251   :  { %814 = vmatmul.msk.f32.vlgmr.msra.gmra.mxu1 %vm117_vm1, %v862_v17 }
 0x253   :  { %813 = vmatmul.msk.f32.vlgmr.msra.gmra.mxu3 %vm117_vm1, %v864_v20 }
 0x254   :  { %234 = vadd.xlane.f32.xlu2 %v233_v29 }
 0x28c   :  { %v365_v30 = vpop.xlane.xlu1 %364 }
 0x28d   :  { %v204_v31 = vpop.f32.mrf.mxu3  ;;  %867 = vrcp.f32 %v365_v30 }
 0x293   :  { %v868_v35 = vpop.eup %867 }
 0x294   :  { %v368_v32 = vpop.xlane.xlu1 %367 }
 0x296   :  { %v230_v33 = vpop.f32.mrf.mxu3 }
 0x29a   :  { %v360_v40 = vpop.f32.mrf.mxu1 }
 0x29c   :  { %v238_v34 = vpop.xlane.xlu1 %237 }
 0x29d   :  { %869 = vrcp.f32 %v238_v34 }
 0x29e   :  { %871 = vrcp.f32 %v368_v32  ;;  %v334_v36 = vpop.f32.mrf.mxu3  ;;  %v498_v43 = vpop.xlane.xlu2 %497 }
 0x29f   :  { %v371_v37 = vmul.f32 %v868_v35, %v334_v36 }
 0x2a1   :  { %635 = vrot.lane.b32.xlu0 %v371_v37, %s993_s10 }
 0x2a3   :  { %v870_v38 = vpop.eup %869 }
 0x2a4   :  { %v872_v39 = vpop.eup %871  ;;  %v242_v41 = vmul.f32 %v870_v38, %v230_v33 }
 0x2a5   :  { %v372_v42 = vmul.f32 %v872_v39, %v360_v40 }
 0x2a6   :  { %v628_v44 = vpop.xlane.xlu1 %627 }
 0x2a7   :  { %873 = vrcp.f32 %v628_v44 }
 0x2a9   :  { %637 = vrot.lane.b32.xlu0 %v372_v42, %s993_s10 }
 0x2ad   :  { %v874_v47 = vpop.eup %873 }
 0x2ae   :  { %v625_v48 = vpop.xlane.xlu0 %624 }
 0x2bf   :  { %v495_v45 = vpop.xlane.xlu2 %494 }
 0x2c0   :  { %875 = vrcp.f32 %v495_v45 }
 0x2c1   :  { %877 = vrcp.f32 %v498_v43 }
 0x2c2   :  { %879 = vrcp.f32 %v625_v48 }
 0x2c6   :  { %v490_v46 = vpop.f32.mrf.mxu1  ;;  %v876_v49 = vpop.eup %875 }
 0x2c7   :  { %v878_v54 = vpop.eup %877  ;;  %v235_v63 = vpop.xlane.xlu2 %234 }
 0x2c8   :  { %v880_v55 = vpop.eup %879  ;;  %v502_v57 = vmul.f32 %v878_v54, %v490_v46  ;;  %881 = vrcp.f32 %v235_v63  ;;  %v849_v54 = vld [vmem:[%s1192_s5] ss:$0 sm:$0xff]  ;;  %s1010_s5 = smov [#allocation8]  }
 0x2c9   :  { %883 = vrcp.f32 %v1009_v25  ;;  %s773_s13 = sshll.u32 %s1010_s5, 4  ;;  %s774_s13 = int_to_ptr.vmem [resolvable:$true] %s773_s13 }
 0x2ce   :  { %v464_v50 = vpop.f32.mrf.mxu3  ;;  %v620_v51 = vpop.f32.mrf.mxu1 }
 0x2cf   :  { %v501_v52 = vmul.f32 %v876_v49, %v464_v50  ;;  %v632_v53 = vmul.f32 %v874_v47, %v620_v51  ;;  %v882_v1 = vpop.eup %881 }
 0x2d0   :  { %v241_v3 = vmul.f32 %v882_v1, %v204_v31  ;;  %v884_v26 = vpop.eup %883 }
 0x2d1   :  { %643 = vrot.lane.b32.xlu2 %v501_v52, %s1007_s27  ;;  %653 = vrot.lane.b32.xlu0 %v632_v53, %s1008_s28  ;;  %v711_v27 = vmul.f32 32.0, %v884_v26  ;;  %vm715_vm4 = vweird.f32 %v884_v26 }
 0x2d3   :  { %v712_v28 = vsub.f32 1.0, %v711_v27 }
 0x2d5   :  { %v713_v29 = vmul.f32 %v884_v26, %v712_v28 }
 0x2d6   :  { %v594_v56 = vpop.f32.mrf.mxu3 }
 0x2d7   :  { %v631_v58 = vmul.f32 %v880_v55, %v594_v56  ;;  %v714_v30 = vadd.f32 %v884_v26, %v713_v29 }
 0x2d9   :  { %645 = vrot.lane.b32.xlu2 %v502_v57, %s1007_s27  ;;  %651 = vrot.lane.b32.xlu1 %v631_v58, %s1008_s28  ;;  %v716_v31 = vsel %vm715_vm4, %v884_v26, %v714_v30  ;;  %v850_v58 = vld [vmem:[%s1193_s6] ss:$0 sm:$0xff] }
 0x313   :  { %v636_v0 = vpop.permute.xlu0 %635 }
 0x314   :  { %v657_v7 = vsel %vm117_vm1, %v241_v3, %v636_v0 }
 0x31b   :  { %v638_v6 = vpop.permute.xlu0 %637 }
 0x31c   :  { %v658_v13 = vsel %vm117_vm1, %v242_v41, %v638_v6 }
 0x32b   :  { %v644_v2 = vpop.permute.xlu2 %643 }
 0x32c   :  { %v660_v8 = vsel %vm659_vm2, %v657_v7, %v644_v2 }
 0x333   :  { %v646_v11 = vpop.permute.xlu2 %645 }
 0x334   :  { %v661_v14 = vsel %vm659_vm2, %v658_v13, %v646_v11 }
 0x343   :  { %v654_v12 = vpop.permute.xlu0 %653 }
 0x344   :  { %v664_v15 = vsel %vm662_vm3, %v661_v14, %v654_v12 }
 0x34b   :  { %v652_v9 = vpop.permute.xlu1 %651 }
 0x34c   :  { %v663_v10 = vsel %vm662_vm3, %v660_v8, %v652_v9 }
 0x34d   :  { %815 = vmatmul.msk.f32.vlgmr.msrb.gmra.mxu2 %vm84_vm0, %v663_v10 }
 0x355   :  { %816 = vmatmul.msk.f32.gmra.mxu2 %vm84_vm0, %v664_v15 }
 0x3d0   :  { %v696_v17 = vpop.f32.mrf.mxu2 }
 0x3d1   :  { %v697_v18 = vadd.f32 %v848_v16, %v696_v17 }
 0x3d3   :  { %v702_v19 = vadd.f32 %v697_v18, %v1069_v4 }
 0x3d5   :  { %v704_v20 = vsel %vm84_vm0, %v702_v19, 0.0 }
 0x3d6   :  { %705 = vadd.xlane.f32.xlu1 %v704_v20 }
 0x3d8   :  { %v699_v21 = vpop.f32.mrf.mxu2 }
 0x3d9   :  { %v700_v22 = vadd.f32 %v848_v16, %v699_v21 }
 0x3db   :  { %v703_v23 = vadd.f32 %v700_v22, %v1073_v5 }
 0x3dd   :  { %v707_v24 = vsel %vm84_vm0, %v703_v23, 0.0 }
 0x3de   :  { %708 = vadd.xlane.f32.xlu2 %v707_v24 }
 0x449   :  { %v706_v4 = vpop.xlane.xlu1 %705 }
 0x44a   :  { %v717_v32 = vmul.f32 %v716_v31, %v706_v4 }
 0x44c   :  { %v719_v33 = vsub.f32 %v702_v19, %v717_v32 }
 0x44e   :  { %v721_v34 = vmul.f32 %v719_v33, %v719_v33 }
 0x450   :  { %v723_v35 = vsel %vm84_vm0, %v721_v34, 0.0 }
 0x451   :  { %724 = vadd.xlane.f32.xlu0 %v723_v35  ;;  %v709_v5 = vpop.xlane.xlu2 %708 }
 0x452   :  { %v718_v36 = vmul.f32 %v716_v31, %v709_v5 }
 0x454   :  { %v720_v37 = vsub.f32 %v703_v23, %v718_v36 }
 0x456   :  { %v722_v38 = vmul.f32 %v720_v37, %v720_v37 }
 0x458   :  { %v726_v39 = vsel %vm84_vm0, %v722_v38, 0.0 }
 0x459   :  { %727 = vadd.xlane.f32.xlu1 %v726_v39 }
 0x4c4   :  { %v725_v40 = vpop.xlane.xlu0 %724 }
 0x4c5   :  { %v729_v41 = vmul.f32 %v725_v40, %v716_v31 }
 0x4c7   :  { %v731_v42 = vadd.f32 1e-06, %v729_v41 }
 0x4c9   :  { %885 = vrsqrt.f32 %v731_v42  ;;  %vm739_vm6 = vweird.f32 %v731_v42 }
 0x4cc   :  { %v728_v43 = vpop.xlane.xlu1 %727 }
 0x4cd   :  { %v730_v44 = vmul.f32 %v728_v43, %v716_v31 }
 0x4cf   :  { %v886_v45 = vpop.eup %885  ;;  %v732_v46 = vadd.f32 1e-06, %v730_v44 }
 0x4d0   :  { %v734_v47 = vmul.f32 %v886_v45, %v731_v42  ;;  %vm740_vm5 = vweird.f32 %v886_v45 }
 0x4d1   :  { %887 = vrsqrt.f32 %v732_v46  ;;  %vm741_vm7 = vmor %vm739_vm6, %vm740_vm5  ;;  %vm749_vm9 = vweird.f32 %v732_v46 }
 0x4d2   :  { %v735_v48 = vmul.f32 %v886_v45, %v734_v47 }
 0x4d4   :  { %v736_v49 = vmul.f32 0.5, %v735_v48 }
 0x4d6   :  { %v737_v50 = vsub.f32 1.5, %v736_v49 }
 0x4d7   :  { %v888_v51 = vpop.eup %887 }
 0x4d8   :  { %v738_v52 = vmul.f32 %v886_v45, %v737_v50  ;;  %v744_v53 = vmul.f32 %v888_v51, %v732_v46  ;;  %vm750_vm8 = vweird.f32 %v888_v51 }
 0x4d9   :  { %vm751_vm10 = vmor %vm749_vm9, %vm750_vm8 }
 0x4da   :  { %v742_v55 = vsel %vm741_vm7, %v886_v45, %v738_v52  ;;  %v745_v56 = vmul.f32 %v888_v51, %v744_v53 }
 0x4db   :  { %v753_v57 = vmul.f32 %v742_v55, %v719_v33 }
 0x4dc   :  { %v746_v59 = vmul.f32 0.5, %v745_v56 }
 0x4dd   :  { %v759_v60 = vmul.f32 %v849_v54, %v753_v57 }
 0x4de   :  { %v747_v61 = vsub.f32 1.5, %v746_v59 }
 0x4df   :  { %v765_v62 = vadd.f32 %v850_v58, %v759_v60 }
 0x4e0   :  { %v748_v63 = vmul.f32 %v888_v51, %v747_v61 }
 0x4e1   :  { %767 = vst.msk [vmem:[#allocation8] sm:$0xff] %vm84_vm0, %v765_v62 }
 0x4e2   :  { %v752_v0 = vsel %vm751_vm10, %v888_v51, %v748_v63 }
 0x4e3   :  { %v754_v1 = vmul.f32 %v752_v0, %v720_v37 }
 0x4e5   :  { %v760_v2 = vmul.f32 %v849_v54, %v754_v1 }
 0x4e7   :  { %v766_v3 = vadd.f32 %v850_v58, %v760_v2 }
 0x4e9   :  { %768 = vst.msk [vmem:[#allocation8 + $0x8] sm:$0xff] %vm84_vm0, %v766_v3 }
 0x4ea   :  { %781 = dma.vmem_to_hbm [thread:$0]  %s774_s13, 256, %s776_s0, [#allocation4], %s992_s9, %s992_s9, %s993_s10  }
 0x4eb   :  { %989 = dma.done.wait [#allocation4], 256  }
 0x4ec   :  { %990 = vsyncadd [#allocation4], 4294967040 }
 0x4ed   :  { %786 = vsyncpa [#allocation3], 1 }
 0x4ee   :  { %787 = vsyncpa [#allocation6], 1 }
 0x4ef   :  { %788 = vsyncpa [#allocation4], 1 }

</bundles_post_ra>
